<compile_context>
chip_gen: v7x
topology: tpu7x:2x2x1
jax: 0.10.0
libtpu: 0.0.40
codegen_flags: <defaults>
</compile_context>

<pallas_src>
import functools
import math

import numpy as np
import jax
import jax.numpy as jnp
from jax import lax
from jax.experimental import pallas as pl
from jax.experimental.pallas import tpu as pltpu

BN_EPS = 1e-5
LEAKY_SLOPE = 0.01        # PyTorch nn.LeakyReLU default negative_slope
_LANE = 128               # lane width / Cout padding granularity
_ROW_ALIGN = 16           # bf16 packed vreg tile rows -> aligned tap offsets


def _round_up(v, m):
    return ((v + m - 1) // m) * m


# ---------------------------------------------------------------------------
# Chip-aware constants and one-time capability probes
# ---------------------------------------------------------------------------
@functools.lru_cache(maxsize=None)
def _vmem_limit_bytes():
    """Scoped-VMEM limit: 48 MiB on 64-MiB parts (v7x), 64 MiB on 128-MiB parts."""
    cap = 64 * 1024 * 1024
    try:
        cap = int(getattr(pltpu.get_tpu_info(), "vmem_capacity_bytes", cap))
    except Exception:
        pass
    return (48 if cap <= 64 * 1024 * 1024 else 64) * 1024 * 1024


@functools.lru_cache(maxsize=None)
def _mxu_width():
    """256 on v6e / v7x (2x256x256 MXU), 128 otherwise (v5e and older)."""
    try:
        kind = jax.devices()[0].device_kind.lower()
    except Exception:
        return 128
    return 256 if ("v6" in kind or "v7" in kind or "7x" in kind) else 128


def _probe_pallas(run):
    """Run a tiny pallas_call; True iff it lowers and executes on this backend."""
    try:
        jax.block_until_ready(run())
        return True
    except Exception:
        return False


@functools.lru_cache(maxsize=None)
def _single_buffer_mode():
    """pl.Buffered(1) for grid-invariant inputs if this jax/Mosaic supports it."""
    def k(a_ref, b_ref, o_ref):
        o_ref[...] = a_ref[...] + b_ref[...]

    def run():
        a = jnp.zeros((8, 128), jnp.float32)
        b = jnp.zeros((16, 128), jnp.float32)
        return pl.pallas_call(
            k,
            out_shape=jax.ShapeDtypeStruct((16, 128), jnp.float32),
            grid=(2,),
            in_specs=[pl.BlockSpec((8, 128), lambda i: (0, 0),
                                   pipeline_mode=pl.Buffered(1)),
                      pl.BlockSpec((8, 128), lambda i: (i, 0))],
            out_specs=pl.BlockSpec((8, 128), lambda i: (i, 0)),
        )(a, b)

    return pl.Buffered(1) if _probe_pallas(run) else None


@functools.lru_cache(maxsize=None)
def _supports_vector_intdiv():
    """True iff i32 vector // and % lower in Mosaic (used for in-kernel BN mask)."""
    def k(o_ref):
        r = lax.broadcasted_iota(jnp.int32, (8, 128), 0)
        o_ref[...] = ((r % 3) * 7 + (r // 5)).astype(jnp.float32)

    def run():
        return pl.pallas_call(
            k, out_shape=jax.ShapeDtypeStruct((8, 128), jnp.float32))()

    return _probe_pallas(run)


# ---------------------------------------------------------------------------
# Pallas kernel: kh row-tap matmuls (kw folded into lanes) + BN + res + act
# ---------------------------------------------------------------------------
def _make_conv_kernel(tap_offsets, m_rows, hq, wq, ho, wo, inv_count,
                      use_bn, act, has_res, iota_mask):
    n_taps = len(tap_offsets)

    def kernel(*refs):
        a_ref, w_ref = refs[0], refs[1]
        o_ref = refs[-1]
        idx = 2
        mask_ref = None
        if use_bn and not iota_mask:
            mask_ref = refs[idx]
            idx += 1
        res_ref = refs[idx] if has_res else None

        # kh row-tap matmuls on the VMEM-resident folded operand.  Offsets are
        # compile-time ints, all multiples of 16 -> no sublane realign copies.
        acc = jnp.dot(a_ref[pl.ds(tap_offsets[0], m_rows), :], w_ref[0],
                      preferred_element_type=jnp.float32)
        for t in range(1, n_taps):
            acc = acc + jnp.dot(a_ref[pl.ds(tap_offsets[t], m_rows), :],
                                w_ref[t], preferred_element_type=jnp.float32)

        if use_bn:
            # Training-mode BatchNorm (gamma=1, beta=0), statistics over ONLY
            # the N*Ho*Wo valid rows.  Cout tiles are independent, so the Cout
            # grid does not bias the per-channel stats.  Two-pass (mean, then
            # centered sum of squares) for numerical robustness.
            if iota_mask:
                r = lax.broadcasted_iota(jnp.int32, (m_rows, 1), 0)
                msk = jnp.logical_and((r % (hq * wq)) // wq < ho,
                                      r % wq < wo).astype(jnp.float32)
            else:
                msk = mask_ref[...]
            mean = jnp.sum(acc * msk, axis=0, keepdims=True) * inv_count
            cent = (acc - mean) * msk
            var = jnp.sum(cent * cent, axis=0, keepdims=True) * inv_count
            acc = (acc - mean) * lax.rsqrt(var + BN_EPS)

        if has_res:
            acc = acc + res_ref[...].astype(jnp.float32)

        if act == "relu":
            acc = jnp.maximum(acc, 0.0)
        elif act == "leaky_relu":
            acc = jnp.where(acc >= 0, acc, LEAKY_SLOPE * acc)

        o_ref[...] = acc.astype(o_ref.dtype)

    return kernel


# ---------------------------------------------------------------------------
# Conv wrapper: pad / stride-phase split / kw lane-fold in XLA, hot path Pallas
# ---------------------------------------------------------------------------
def conv_block(x, w, *, stride=1, padding=0, use_bn=True, act="none",
               residual=None, out_dtype=jnp.bfloat16):
    """x: (N,H,W,Cin).  w: (KH,KW,Cin,Cout) f32.  residual: (N,Ho,Wo,Cout) or None.
    Returns (N, Ho, Wo, Cout) in `out_dtype` (bf16 by default).
    Fused conv(+BN)(+residual)(+act) Pallas kernel (bf16 MXU, f32 accumulation)."""
    n, h, wdim, cin = x.shape
    kh, kw, cin_w, cout = w.shape
    assert cin_w == cin, (cin_w, cin)

    # 1x1 convs: fold the stride into a free XLA slice, then treat as stride 1.
    if kh == 1 and kw == 1 and stride > 1:
        x = x[:, ::stride, ::stride, :]
        n, h, wdim, cin = x.shape
        stride = 1
    s = stride

    ho = (h + 2 * padding - kh) // s + 1
    wo = (wdim + 2 * padding - kw) // s + 1

    # Conv zero-padding plus alignment so every stride phase has shape (hq, wq)
    # and wq is a multiple of 16 -> all row-tap offsets are bf16-tile aligned
    # and the flat row count is a legal bf16 block sublane extent.
    hp, wp = h + 2 * padding, wdim + 2 * padding
    hq = -(-hp // s)
    wq = _round_up(-(-wp // s), _ROW_ALIGN)
    xp = jnp.pad(x.astype(jnp.bfloat16),
                 ((0, 0),
                  (padding, padding + hq * s - hp),
                  (padding, padding + wq * s - wp),
                  (0, 0)))

    m_rows = n * hq * wq                       # multiple of 16 (wq is)
    kdim = kw * cin                            # folded contraction depth
    kdim_pad = _round_up(kdim, _LANE)
    cout_pad = _round_up(cout, _LANE)
    tc = 256 if (_mxu_width() >= 256 and cout_pad % 256 == 0) else _LANE

    # Activation operand: for each stride phase-row `a`, lane-concat the kw
    # column taps (phase-col b = dj % s, column shift cj = dj // s, which is a
    # pure row shift in the flat (n,i,j) layout); row-concat the phase-row
    # blocks.  The remaining in-kernel taps are the kh row taps with offsets
    # (di % s) * m_rows + (di // s) * wq, all multiples of 16.
    blocks = []
    for a in range(s):
        lanes = []
        for dj in range(kw):
            b, cj = dj % s, dj // s
            pf = xp[:, a::s, b::s, :].reshape(m_rows, cin)
            if cj:
                pf = jnp.pad(pf, ((0, cj), (0, 0)))[cj:cj + m_rows]
            lanes.append(pf)
        blocks.append(jnp.concatenate(lanes, axis=1) if kw > 1 else lanes[0])
    a_mat = jnp.concatenate(blocks, axis=0) if s > 1 else blocks[0]

    tap_offsets = tuple((di % s) * m_rows + (di // s) * wq for di in range(kh))
    r_a = max(max(tap_offsets) + m_rows, s * m_rows)
    a_mat = jnp.pad(a_mat, ((0, r_a - s * m_rows), (0, kdim_pad - kdim)))

    # Weights: (kh, kw, cin, cout) -> (kh, kw*cin, cout); pad to lane multiples.
    w_mat = jnp.pad(w.reshape(kh, kdim, cout).astype(jnp.bfloat16),
                    ((0, 0), (0, kdim_pad - kdim), (0, cout_pad - cout)))

    a_kwargs = {}
    pm = _single_buffer_mode()
    if pm is not None:
        a_kwargs["pipeline_mode"] = pm        # single-buffer the invariant operand

    args = [a_mat, w_mat]
    in_specs = [
        pl.BlockSpec((r_a, kdim_pad), lambda j: (0, 0), **a_kwargs),
        pl.BlockSpec((kh, kdim_pad, tc), lambda j: (0, 0, j)),
    ]

    iota_mask = False
    if use_bn:
        iota_mask = _supports_vector_intdiv()
        if not iota_mask:
            # Fallback: tiny host-precomputed valid-row mask input.
            rr = np.arange(m_rows)
            msk = (((rr % (hq * wq)) // wq < ho) & (rr % wq < wo))
            args.append(jnp.asarray(msk.astype(np.float32).reshape(m_rows, 1)))
            in_specs.append(pl.BlockSpec((m_rows, 1), lambda j: (0, 0), **a_kwargs))

    if residual is not None:
        res = jnp.pad(residual.astype(jnp.bfloat16),
                      ((0, 0), (0, hq - ho), (0, wq - wo), (0, cout_pad - cout)))
        args.append(res.reshape(m_rows, cout_pad))
        in_specs.append(pl.BlockSpec((m_rows, tc), lambda j: (0, j)))

    kernel = _make_conv_kernel(tap_offsets, m_rows, hq, wq, ho, wo,
                               1.0 / float(n * ho * wo), use_bn, act,
                               residual is not None, iota_mask)

    out = pl.pallas_call(
        kernel,
        out_shape=jax.ShapeDtypeStruct((m_rows, cout_pad), out_dtype),
        grid=(cout_pad // tc,),
        in_specs=in_specs,
        out_specs=pl.BlockSpec((m_rows, tc), lambda j: (0, j)),
        compiler_params=pltpu.CompilerParams(
            dimension_semantics=("parallel",),
            vmem_limit_bytes=_vmem_limit_bytes()),
    )(*args)

    return out.reshape(n, hq, wq, cout_pad)[:, :ho, :wo, :cout]


# ---------------------------------------------------------------------------
# Small XLA pieces (per the perf review: conv1 and OutConv stay in XLA)
# ---------------------------------------------------------------------------
def _conv1_bn_lrelu(x, w):
    # K = 27, Cout = 64: would badly under-fill the MXU -> plain XLA.
    # conv1's BN is unconditional in the reference (nn.Sequential).
    y = lax.conv_general_dilated(x, w, window_strides=(2, 2),
                                 padding=((1, 1), (1, 1)),
                                 dimension_numbers=("NHWC", "HWIO", "NHWC"))
    mean = jnp.mean(y, axis=(0, 1, 2), keepdims=True)
    var = jnp.mean(jnp.square(y - mean), axis=(0, 1, 2), keepdims=True)
    y = (y - mean) * lax.rsqrt(var + BN_EPS)
    y = jnp.where(y >= 0, y, LEAKY_SLOPE * y)
    return y.astype(jnp.bfloat16)


def _outconv(x, w, b):
    # 1x1 conv with Cout = n_classes (=1): worst-case lane utilisation for a
    # Pallas output, so this tiny matmul stays in XLA (f32 result).
    # TODO(synk): OutConv bias keeps PyTorch's default uniform init in the
    # reference; zeros are used here (torch RNG not reproducible).
    return jnp.einsum("nhwc,co->nhwo", x, w[0, 0]) + b


def _bilinear_up2(x):
    """2x bilinear upsample, align_corners=True (standard UNet Up)."""
    n, h, w, c = x.shape

    def axis_idx(size):
        out = 2 * size
        if size == 1:
            z = jnp.zeros((out,), jnp.int32)
            return z, z, jnp.zeros((out,), jnp.float32)
        pos = jnp.arange(out, dtype=jnp.float32) * (size - 1) / (out - 1)
        lo = jnp.clip(jnp.floor(pos).astype(jnp.int32), 0, size - 2)
        return lo, lo + 1, pos - lo.astype(jnp.float32)

    hl, hh, hf = axis_idx(h)
    wl, wh, wf = axis_idx(w)
    xr = (x[:, hl, :, :] * (1.0 - hf)[None, :, None, None]
          + x[:, hh, :, :] * hf[None, :, None, None])
    return (xr[:, :, wl, :] * (1.0 - wf)[None, None, :, None]
            + xr[:, :, wh, :] * wf[None, None, :, None])


# ---------------------------------------------------------------------------
# Network blocks
# ---------------------------------------------------------------------------
def _basic_block(x, bp, stride, use_bn):
    # TODO(synk): BasicBlock body is not in the reference source; standard
    # ResNet-18 BasicBlock (bias-free 3x3 convs, BN gated by use_bn, residual,
    # ReLU) is assumed.
    out = conv_block(x, bp["conv1"], stride=stride, padding=1,
                     use_bn=use_bn, act="relu")
    if "down" in bp:
        identity = conv_block(x, bp["down"], stride=stride, padding=0,
                              use_bn=use_bn, act="none")
    else:
        identity = x
    # conv2 (+BN) + residual add + ReLU fused in a single Pallas kernel.
    return conv_block(out, bp["conv2"], stride=1, padding=1, use_bn=use_bn,
                      act="relu", residual=identity)


def _res_layer(x, blocks, use_bn):
    x = _basic_block(x, blocks[0], 2, use_bn)
    x = _basic_block(x, blocks[1], 1, use_bn)
    return x


def _up_block(x, skip, up, use_bn):
    # TODO(synk): Up class body is not in the reference source; standard UNet Up
    # assumed (2x bilinear align_corners=True upsample, pad, cat([skip, x]),
    # DoubleConv).  TODO(synk): pass skip / upsampled as separate kernel inputs
    # (Cin-split weights) instead of the XLA concat.
    x = _bilinear_up2(x)
    dh = skip.shape[1] - x.shape[1]
    dw = skip.shape[2] - x.shape[2]
    if dh > 0 or dw > 0:
        x = jnp.pad(x, ((0, 0),
                        (max(dh, 0) // 2, max(dh, 0) - max(dh, 0) // 2),
                        (max(dw, 0) // 2, max(dw, 0) - max(dw, 0) // 2),
                        (0, 0)))
    if dh < 0 or dw < 0:
        x = x[:, :skip.shape[1], :skip.shape[2], :]
    x = jnp.concatenate([skip, x.astype(skip.dtype)], axis=-1)
    x = conv_block(x, up["c1"], stride=1, padding=1, use_bn=use_bn, act="relu")
    x = conv_block(x, up["c2"], stride=1, padding=1, use_bn=use_bn, act="relu")
    return x


# ---------------------------------------------------------------------------
# Parameter init (matches: conv weights ~ N(0, sqrt(2/(kh*kw*cout))), BN 1/0)
# ---------------------------------------------------------------------------
class _KeyGen:
    def __init__(self, key):
        self._key = key

    def __call__(self):
        self._key, sub = jax.random.split(self._key)
        return sub


def _conv_w(kg, kh, kw, cin, cout):
    return (jax.random.normal(kg(), (kh, kw, cin, cout), jnp.float32)
            * math.sqrt(2.0 / (kh * kw * cout)))


def init_params(key, n_classes=1):
    kg = _KeyGen(key)
    conv1_channels = 64
    channels = [conv1_channels, 128, 256, 512]
    up_channels = [256, 128, 64, 32]

    params = {"conv1": _conv_w(kg, 3, 3, 3, conv1_channels)}

    inplanes = 64
    for li, planes in enumerate(channels, start=1):
        b0 = {"conv1": _conv_w(kg, 3, 3, inplanes, planes),
              "conv2": _conv_w(kg, 3, 3, planes, planes),
              "down": _conv_w(kg, 1, 1, inplanes, planes)}   # stride-2 downsample
        b1 = {"conv1": _conv_w(kg, 3, 3, planes, planes),
              "conv2": _conv_w(kg, 3, 3, planes, planes)}
        params[f"layer{li}"] = [b0, b1]
        inplanes = planes

    params["up1"] = {"c1": _conv_w(kg, 3, 3, channels[3] + channels[2], up_channels[0]),
                     "c2": _conv_w(kg, 3, 3, up_channels[0], up_channels[0])}
    params["up2"] = {"c1": _conv_w(kg, 3, 3, channels[1] + up_channels[0], up_channels[1]),
                     "c2": _conv_w(kg, 3, 3, up_channels[1], up_channels[1])}
    params["outc_w"] = _conv_w(kg, 1, 1, up_channels[1], n_classes)
    params["outc_b"] = jnp.zeros((n_classes,), jnp.float32)
    return params


# ---------------------------------------------------------------------------
# Forward pass:  [bt, 3, H, W] -> logits [bt, n_classes, H/8, W/8]
# ---------------------------------------------------------------------------
def unet_resnet18_forward(params, x, use_bn=False):
    x = jnp.transpose(x, (0, 2, 3, 1)).astype(jnp.float32)      # NCHW -> NHWC
    x1 = _conv1_bn_lrelu(x, params["conv1"])                     # H/2,  64
    x2 = _res_layer(x1, params["layer1"], use_bn)                # H/4,  64
    x3 = _res_layer(x2, params["layer2"], use_bn)                # H/8,  128
    x4 = _res_layer(x3, params["layer3"], use_bn)                # H/16, 256
    x5 = _res_layer(x4, params["layer4"], use_bn)                # H/32, 512
    y = _up_block(x5, x4, params["up1"], use_bn)                 # H/16, 256
    y = _up_block(y, x3, params["up2"], use_bn)                  # H/8,  128
    logits = _outconv(y, params["outc_w"], params["outc_b"])     # H/8,  n_classes
    return jnp.transpose(logits, (0, 3, 1, 2))                   # back to NCHW


# ---------------------------------------------------------------------------
# Self-check: conv_block vs. an XLA reference (same bf16 operands, f32 acc)
# ---------------------------------------------------------------------------
def _reference_conv_block(x, w, *, stride, padding, use_bn, act, residual=None):
    y = lax.conv_general_dilated(
        x.astype(jnp.bfloat16), w.astype(jnp.bfloat16),
        (stride, stride), ((padding, padding), (padding, padding)),
        dimension_numbers=("NHWC", "HWIO", "NHWC"),
        preferred_element_type=jnp.float32)
    if use_bn:
        mean = jnp.mean(y, axis=(0, 1, 2), keepdims=True)
        var = jnp.mean(jnp.square(y - mean), axis=(0, 1, 2), keepdims=True)
        y = (y - mean) * lax.rsqrt(var + BN_EPS)
    if residual is not None:
        y = y + residual.astype(jnp.float32)
    if act == "relu":
        y = jnp.maximum(y, 0.0)
    elif act == "leaky_relu":
        y = jnp.where(y >= 0, y, LEAKY_SLOPE * y)
    return y


def _self_check(key):
    k1, k2, k3, k4, k5 = jax.random.split(key, 5)
    # stride-1 3x3 conv + BN + residual + ReLU
    x = jax.random.normal(k1, (2, 8, 8, 32), jnp.float32)
    w = jax.random.normal(k2, (3, 3, 32, 48), jnp.float32) * 0.05
    r = (jax.random.normal(k3, (2, 8, 8, 48), jnp.float32) * 0.5).astype(jnp.bfloat16)
    got = conv_block(x, w, stride=1, padding=1, use_bn=True, act="relu",
                     residual=r).astype(jnp.float32)
    want = _reference_conv_block(x, w, stride=1, padding=1, use_bn=True,
                                 act="relu", residual=r)
    err = float(jnp.max(jnp.abs(got - want)))
    assert err < 5e-2, f"stride-1 conv_block self-check failed: max err {err}"
    # stride-2 3x3 conv on odd spatial dims + BN + LeakyReLU
    x = jax.random.normal(k4, (2, 9, 9, 16), jnp.float32)
    w = jax.random.normal(k5, (3, 3, 16, 24), jnp.float32) * 0.05
    got = conv_block(x, w, stride=2, padding=1, use_bn=True,
                     act="leaky_relu").astype(jnp.float32)
    want = _reference_conv_block(x, w, stride=2, padding=1, use_bn=True,
                                 act="leaky_relu")
    err = float(jnp.max(jnp.abs(got - want)))
    assert err < 5e-2, f"stride-2 conv_block self-check failed: max err {err}"


if __name__ == "__main__":
    n_classes = 1
    key = jax.random.PRNGKey(0)
    pkey, xkey, ckey = jax.random.split(key, 3)

    _self_check(ckey)

    params = init_params(pkey, n_classes=n_classes)
    x = jax.random.normal(xkey, (2, 3, 32, 32), jnp.float32)     # [bt, c, h, w]

    # use_bn mirrors the PyTorch constructor flag (default False); exercise both.
    for use_bn in (False, True):
        fwd = jax.jit(functools.partial(unet_resnet18_forward, use_bn=use_bn))
        out = fwd(params, x)
        jax.block_until_ready(out)
        assert out.shape == (2, n_classes, 4, 4), out.shape
        assert bool(jnp.all(jnp.isfinite(out))), "non-finite output"
    print("KERNEL_OK")
</pallas_src>

<mosaic_0001>
module attributes {stable_mosaic.version = 11 : i64} {
  func.func @k(%arg0: i32, %arg1: memref<8x128xf32, #tpu.memory_space<vmem>>, %arg2: memref<8x128xf32, #tpu.memory_space<vmem>>, %arg3: memref<8x128xf32, #tpu.memory_space<vmem>>) attributes {dimension_semantics = [#tpu.dimension_semantics<arbitrary>], iteration_bounds = array<i64: 2>, scalar_prefetch = 0 : i64, scratch_operands = 0 : i64, tpu.core_type = #tpu.core_type<tc>, window_params = [{pipeline_mode = #tpu.pipeline_mode<synchronous>, transform_indices = @transform_0, window_bounds = array<i64: 8, 128>}, {transform_indices = @transform_1, window_bounds = array<i64: 8, 128>}, {transform_indices = @transform_2, window_bounds = array<i64: 8, 128>}]} {
    %c0 = arith.constant 0 : index
    %c0_0 = arith.constant 0 : index
    %0 = vector.load %arg1[%c0, %c0_0] : memref<8x128xf32, #tpu.memory_space<vmem>>, vector<8x128xf32>
    %c0_1 = arith.constant 0 : index
    %c0_2 = arith.constant 0 : index
    %1 = vector.load %arg2[%c0_1, %c0_2] : memref<8x128xf32, #tpu.memory_space<vmem>>, vector<8x128xf32>
    %2 = arith.addf %0, %1 : vector<8x128xf32>
    %c0_3 = arith.constant 0 : index
    %c0_4 = arith.constant 0 : index
    %3 = vector.load %arg3[%c0_3, %c0_4] : memref<8x128xf32, #tpu.memory_space<vmem>>, vector<8x128xf32>
    tpu.vector_store %arg3[%c0_3, %c0_4], %2 {strides = array<i32>} : memref<8x128xf32, #tpu.memory_space<vmem>>, vector<8x128xf32>,
    return
  }
  func.func @transform_0(%arg0: i32) -> (i32, i32) {
    %c0_i32 = arith.constant 0 : i32
    %c0_i32_0 = arith.constant 0 : i32
    %c0_i32_1 = arith.constant 0 : i32
    return %c0_i32, %c0_i32_0 : i32, i32
  }
  func.func @transform_1(%arg0: i32) -> (i32, i32) {
    %c0_i32 = arith.constant 0 : i32
    %c0_i32_0 = arith.constant 0 : i32
    return %arg0, %c0_i32 : i32, i32
  }
  func.func @transform_2(%arg0: i32) -> (i32, i32) {
    %c0_i32 = arith.constant 0 : i32
    %c0_i32_0 = arith.constant 0 : i32
    return %arg0, %c0_i32 : i32, i32
  }
}

module attributes {stable_mosaic.version = 11 : i64} {
  func.func @kernel(%arg0: i32, %arg1: memref<352x128xbf16, #tpu.memory_space<vmem>>, %arg2: memref<3x128x128xbf16, #tpu.memory_space<vmem>>, %arg3: memref<320x1xf32, #tpu.memory_space<vmem>>, %arg4: memref<320x128xbf16, #tpu.memory_space<vmem>>, %arg5: memref<320x128xbf16, #tpu.memory_space<vmem>>) attributes {dimension_semantics = [#tpu.dimension_semantics<parallel>], iteration_bounds = array<i64: 1>, scalar_prefetch = 0 : i64, scratch_operands = 0 : i64, tpu.core_type = #tpu.core_type<tc>, window_params = [{pipeline_mode = #tpu.pipeline_mode<synchronous>, transform_indices = @transform_0, window_bounds = array<i64: 352, 128>}, {transform_indices = @transform_1, window_bounds = array<i64: 3, 128, 128>}, {pipeline_mode = #tpu.pipeline_mode<synchronous>, transform_indices = @transform_2, window_bounds = array<i64: 320, 1>}, {transform_indices = @transform_3, window_bounds = array<i64: 320, 128>}, {transform_indices = @transform_4, window_bounds = array<i64: 320, 128>}]} {
    %c0 = arith.constant 0 : index
    %c0_0 = arith.constant 0 : index
    %0 = vector.load %arg1[%c0, %c0_0] : memref<352x128xbf16, #tpu.memory_space<vmem>>, vector<320x128xbf16>
    %c0_1 = arith.constant 0 : index
    %c0_2 = arith.constant 0 : index
    %c0_3 = arith.constant 0 : index
    %1 = vector.load %arg2[%c0_1, %c0_2, %c0_3] : memref<3x128x128xbf16, #tpu.memory_space<vmem>>, vector<1x128x128xbf16>
    %2 = vector.shape_cast %1 : vector<1x128x128xbf16> to vector<128x128xbf16>
    %cst = arith.constant dense<0.000000e+00> : vector<320x128xf32>
    %3 = tpu.matmul %0, %2, %cst {dimension_numbers = #tpu.dot_dimension_numbers<[1], [0], [0], [1], [0, 0, 1, 1], [], []>} : vector<320x128xbf16>, vector<128x128xbf16>, vector<320x128xf32> -> vector<320x128xf32>
    %c16 = arith.constant 16 : index
    %c0_4 = arith.constant 0 : index
    %4 = vector.load %arg1[%c16, %c0_4] : memref<352x128xbf16, #tpu.memory_space<vmem>>, vector<320x128xbf16>
    %c1 = arith.constant 1 : index
    %c0_5 = arith.constant 0 : index
    %c0_6 = arith.constant 0 : index
    %5 = vector.load %arg2[%c1, %c0_5, %c0_6] : memref<3x128x128xbf16, #tpu.memory_space<vmem>>, vector<1x128x128xbf16>
    %6 = vector.shape_cast %5 : vector<1x128x128xbf16> to vector<128x128xbf16>
    %cst_7 = arith.constant dense<0.000000e+00> : vector<320x128xf32>
    %7 = tpu.matmul %4, %6, %cst_7 {dimension_numbers = #tpu.dot_dimension_numbers<[1], [0], [0], [1], [0, 0, 1, 1], [], []>} : vector<320x128xbf16>, vector<128x128xbf16>, vector<320x128xf32> -> vector<320x128xf32>
    %8 = arith.addf %3, %7 : vector<320x128xf32>
    %c32 = arith.constant 32 : index
    %c0_8 = arith.constant 0 : index
    %9 = vector.load %arg1[%c32, %c0_8] : memref<352x128xbf16, #tpu.memory_space<vmem>>, vector<320x128xbf16>
    %c2 = arith.constant 2 : index
    %c0_9 = arith.constant 0 : index
    %c0_10 = arith.constant 0 : index
    %10 = vector.load %arg2[%c2, %c0_9, %c0_10] : memref<3x128x128xbf16, #tpu.memory_space<vmem>>, vector<1x128x128xbf16>
    %11 = vector.shape_cast %10 : vector<1x128x128xbf16> to vector<128x128xbf16>
    %cst_11 = arith.constant dense<0.000000e+00> : vector<320x128xf32>
    %12 = tpu.matmul %9, %11, %cst_11 {dimension_numbers = #tpu.dot_dimension_numbers<[1], [0], [0], [1], [0, 0, 1, 1], [], []>} : vector<320x128xbf16>, vector<128x128xbf16>, vector<320x128xf32> -> vector<320x128xf32>
    %13 = arith.addf %8, %12 : vector<320x128xf32>
    %c0_12 = arith.constant 0 : index
    %c0_13 = arith.constant 0 : index
    %14 = vector.load %arg3[%c0_12, %c0_13] : memref<320x1xf32, #tpu.memory_space<vmem>>, vector<320x1xf32>
    %15 = vector.broadcast %14 : vector<320x1xf32> to vector<320x128xf32>
    %16 = arith.mulf %13, %15 : vector<320x128xf32>
    %cst_14 = arith.constant dense<0.000000e+00> : vector<128xf32>
    %17 = vector.multi_reduction <add>, %16, %cst_14 [0] : vector<320x128xf32> to vector<128xf32>
    %18 = vector.shape_cast %17 : vector<128xf32> to vector<1x128xf32>
    %cst_15 = arith.constant 7.812500e-03 : f32
    %19 = vector.broadcast %cst_15 : f32 to vector<1x128xf32>
    %20 = arith.mulf %18, %19 : vector<1x128xf32>
    %21 = vector.broadcast %20 : vector<1x128xf32> to vector<320x128xf32>
    %22 = arith.subf %13, %21 : vector<320x128xf32>
    %23 = vector.broadcast %14 : vector<320x1xf32> to vector<320x128xf32>
    %24 = arith.mulf %22, %23 : vector<320x128xf32>
    %25 = arith.mulf %24, %24 : vector<320x128xf32>
    %cst_16 = arith.constant dense<0.000000e+00> : vector<128xf32>
    %26 = vector.multi_reduction <add>, %25, %cst_16 [0] : vector<320x128xf32> to vector<128xf32>
    %27 = vector.shape_cast %26 : vector<128xf32> to vector<1x128xf32>
    %cst_17 = arith.constant 7.812500e-03 : f32
    %28 = vector.broadcast %cst_17 : f32 to vector<1x128xf32>
    %29 = arith.mulf %27, %28 : vector<1x128xf32>
    %30 = vector.broadcast %20 : vector<1x128xf32> to vector<320x128xf32>
    %31 = arith.subf %13, %30 : vector<320x128xf32>
    %cst_18 = arith.constant 9.99999974E-6 : f32
    %32 = vector.broadcast %cst_18 : f32 to vector<1x128xf32>
    %33 = arith.addf %29, %32 : vector<1x128xf32>
    %34 = math.rsqrt %33 : vector<1x128xf32>
    %35 = vector.broadcast %34 : vector<1x128xf32> to vector<320x128xf32>
    %36 = arith.mulf %31, %35 : vector<320x128xf32>
    %c0_19 = arith.constant 0 : index
    %c0_20 = arith.constant 0 : index
    %37 = vector.load %arg4[%c0_19, %c0_20] : memref<320x128xbf16, #tpu.memory_space<vmem>>, vector<320x128xbf16>
    %38 = arith.extf %37 : vector<320x128xbf16> to vector<320x128xf32>
    %39 = arith.addf %36, %38 : vector<320x128xf32>
    %cst_21 = arith.constant 0.000000e+00 : f32
    %40 = vector.broadcast %cst_21 : f32 to vector<320x128xf32>
    %41 = arith.maximumf %39, %40 : vector<320x128xf32>
    %42 = arith.truncf %41 : vector<320x128xf32> to vector<320x128xbf16>
    %c0_22 = arith.constant 0 : index
    %c0_23 = arith.constant 0 : index
    %43 = vector.load %arg5[%c0_22, %c0_23] : memref<320x128xbf16, #tpu.memory_space<vmem>>, vector<320x128xbf16>
    tpu.vector_store %arg5[%c0_22, %c0_23], %42 {strides = array<i32>} : memref<320x128xbf16, #tpu.memory_space<vmem>>, vector<320x128xbf16>,
    return
  }
  func.func @transform_0(%arg0: i32) -> (i32, i32) {
    %c0_i32 = arith.constant 0 : i32
    %c0_i32_0 = arith.constant 0 : i32
    %c0_i32_1 = arith.constant 0 : i32
    return %c0_i32, %c0_i32_0 : i32, i32
  }
  func.func @transform_1(%arg0: i32) -> (i32, i32, i32) {
    %c0_i32 = arith.constant 0 : i32
    %c0_i32_0 = arith.constant 0 : i32
    %c0_i32_1 = arith.constant 0 : i32
    return %c0_i32, %c0_i32_0, %arg0 : i32, i32, i32
  }
  func.func @transform_2(%arg0: i32) -> (i32, i32) {
    %c0_i32 = arith.constant 0 : i32
    %c0_i32_0 = arith.constant 0 : i32
    %c0_i32_1 = arith.constant 0 : i32
    return %c0_i32, %c0_i32_0 : i32, i32
  }
  func.func @transform_3(%arg0: i32) -> (i32, i32) {
    %c0_i32 = arith.constant 0 : i32
    %c0_i32_0 = arith.constant 0 : i32
    return %c0_i32, %arg0 : i32, i32
  }
  func.func @transform_4(%arg0: i32) -> (i32, i32) {
    %c0_i32 = arith.constant 0 : i32
    %c0_i32_0 = arith.constant 0 : i32
    return %c0_i32, %arg0 : i32, i32
  }
}

</mosaic_0001>

<bundles_post_ra>
// kernel: tpu_custom_call.1
= control target key start
LH: loop header
LB: loop body
LE: loop exit
PB: predicated region body
PF: predicated region fallthrough
CT: control target
= control target key end

     0   :  { %7 = vsyncpa [#allocation3], 0  ;;  %s692_s0 = inlined_call_operand.hbm [shape: f32[8,128], index: 0, kind: input, shape index: {}]   ;;  %s693_s1 = inlined_call_operand.hbm [shape: f32[16,128], index: 1, kind: input, shape index: {}]   ;;  %s694_s2 = inlined_call_operand.hbm [shape: f32[16,128], index: 2, kind: output, shape index: {}]  }
   0x1   :  { %8 = vsyncpa [#allocation6], 0 }
   0x2   :  { %10 = vsyncpa [#allocation6 + $0x1], 0 }
   0x3   :  { %11 = vsyncpa [#allocation4], 0 }
   0x4   :  { %13 = vsyncpa [#allocation4 + $0x1], 0  ;;  %s491_s9 = smov 0   ;;  %s493_s10 = smov 0  }
   0x5   :  { %s495_s11 = smov 0   ;;  %s497_s12 = smov 0  }
   0x6 LB: > { %s512_s13 = sadd.s32 4294967295, %s471_s12   ;;  %s272_s14 = sadd.s32 4294967294, %s471_s12   ;;  %s471_s12 = sphi %s497_s12, %s718_s12   ;;  %s467_s11 = sphi %s495_s11, %s717_s11   ;;  %s463_s10 = sphi %s493_s10, %s716_s10   ;;  %s459_s9 = sphi %s491_s9, %s715_s9  }
   0x7   : > { %p60_p0 = scmp.ne.s32.totalorder %s463_s10, %s459_s9  ;;  %p695_p1 = scmp.eq.s32.totalorder %s512_s13, 0 }
   0x8   : > { %p90_p3 = scmp.eq.s32.totalorder %s272_s14, 1  ;;  %p273_p5 = scmp.ge.s32.totalorder %s471_s12, 1 }
   0x9   : > { %p521_p4 = por %p695_p1, %p60_p0  ;;  %p97_p7 = scmp.lt.s32.totalorder %s471_s12, 3 }
   0xa   : > { %p526_p6 = por %p90_p3, %p60_p0  ;;  %s473_s18 = smov [#allocation2]  }
   0xb   : > { %s698_s15 = scalar_select %p521_p4, 1, 0 }
   0xc   : > { %s699_s16 = scalar_select %p526_p6, 1, 0 }
   0xd   : > { %p531_p8 = pnand %p273_p5, %p97_p7  ;;  %s110_s19 = sshll.u32 %s473_s18, 4  ;;  %s111_s19 = int_to_ptr.vmem [resolvable:$true] %s110_s19 }
   0xe   : > { %s539_s20 = sadd.s32 1, %s471_s12   ;;  %s47_s24 = sadd.s32 1, %s467_s11 }
   0xf   : > { %s700_s17 = scalar_select %p531_p8, 1, 0 }
  0x10   : > { %p294_p10 = pneg %p531_p8  ;;  %s44_s22 = ssub.s32 %s471_s12, %s539_s20 }
  0x11   : > { %p549_p12 = scmp.eq.s32.totalorder %s44_s22, 0  ;;  %s343_s27 = scalar_lea.hbm %s692_s0, 128 }
  0x12   : > { %p543_p11 = pnand %p294_p10, %p695_p1  ;;  %p344_p0 = scmp.ne.s32.totalorder %s692_s0, %s343_s27 }
  0x13   : > { %s702_s23 = scalar_select %p549_p12, 1, 0 }
  0x14   : > { %p345_p3 = pneg %p543_p11  ;;  %p350_p10 = scmp.lt.u32.totalorder %s343_s27, %s692_s0 }
  0x16   : > { %p346_p5 = pnand %p345_p3, %p344_p0 }
  0x18   : > { %p347_p7 = pneg %p346_p5 }
  0x1a   : > { %p352_p9 = pnand %p350_p10, %p347_p7 }
  0x1c   : > { %355 = shalt.err (!%p352_p9)
}
  0x1d   : > { %s356_s4 = scalar_lea.vmem %s111_s19, 128  ;;  %p364_p6 = scmp.lt.s32.totalorder %s111_s19, %s111_s19 }
  0x1e   : > { %p357_p1 = scmp.ne.s32.totalorder %s111_s19, %s356_s4  ;;  %p365_p4 = scmp.lt.s32.totalorder %s356_s4, %s356_s4 }
  0x20   : > { %p359_p2 = pnand %p357_p1, %p345_p3  ;;  %p366_p8 = por %p365_p4, %p364_p6 }
  0x22   : > { %p360_p13 = pneg %p359_p2 }
  0x24   : > { %p367_p12 = pnand %p366_p8, %p360_p13 }
  0x26   : > { %370 = shalt.err (!%p367_p12)
}
  0x27   : > { %297 = dma.hbm_to_vmem [thread:$0]  (!%p543_p11), %s692_s0, 128, %s111_s19, [#allocation3]  }
  0x28   : > { %p703_p1 = scmp.ne.s32.totalorder %s702_s23, 0  ;;  %p55_p2 = scmp.eq.s32.totalorder %s471_s12, 0 }
  0x29   : > { %p704_p4 = scmp.ne.s32.totalorder %s467_s11, %s463_s10  ;;  %p705_p6 = scmp.eq.s32.totalorder %s512_s13, 1 }
  0x2a   : > { %s575_s7 = scalar_select %p703_p1, %s467_s11, %s47_s24  }
  0x2b   : > { %p583_p8 = por %p705_p6, %p704_p4  ;;  %p307_p9 = scmp.lt.s32.totalorder %s471_s12, 2 }
  0x2c   : > { %s121_s14 = sand.u32 1, %s467_s11   ;;  %p707_p12 = pmov %p704_p4 }
  0x2d   : > { %s276_s18 = sshll.u32 %s121_s14, 3  ;;  %s277_s21 = sshll.u32 %s471_s12, 7 }
  0x2e   : > { %p56_p13 = por %p55_p2, %p707_p12  ;;  %s596_s19 = scalar_lea.hbm %s693_s1, %s277_s21 }
  0x2f   : > { %s125_s23 = scalar_lea.vmem [#allocation5], %s276_s18  ;;  %s122_s27 = scalar_lea.sflag [#allocation6], %s121_s14 }
  0x30   : > { %s132_s24 = sshll.u32 %s125_s23, 4  ;;  %p598_p11 = pnand %p307_p9, %p56_p13  ;;  %s602_s24 = int_to_ptr.vmem [resolvable:$true] %s132_s24 }
  0x31   : > { %s371_s28 = scalar_lea.hbm %s596_s19, 128  ;;  %s376_s3 = scalar_lea.hbm %s693_s1, 256 }
  0x32   : > { %p372_p0 = scmp.ne.s32.totalorder %s596_s19, %s371_s28  ;;  %p373_p3 = pneg %p598_p11 }
  0x33   : > { %p377_p10 = scmp.lt.u32.totalorder %s596_s19, %s693_s1  ;;  %p378_p1 = scmp.lt.u32.totalorder %s376_s3, %s371_s28 }
  0x34   : > { %p374_p5 = pnand %p373_p3, %p372_p0  ;;  %p380_p4 = scmp.lt.u32.totalorder %s371_s28, %s596_s19 }
  0x35   : > { %p379_p2 = por %p378_p1, %p377_p10 }
  0x36   : > { %p375_p7 = pneg %p374_p5 }
  0x37   : > { %p381_p6 = por %p380_p4, %p379_p2 }
  0x39   : > { %p382_p9 = pnand %p381_p6, %p375_p7 }
  0x3b   : > { %385 = shalt.err (!%p382_p9)
}
  0x3c   : > { %s386_s6 = scalar_lea.vmem %s602_s24, 128  ;;  %s474_s14 = smov [#allocation5]  }
  0x3d   : > { %p387_p12 = scmp.ne.s32.totalorder %s602_s24, %s386_s6  ;;  %s391_s18 = sshll.u32 %s474_s14, 4  ;;  %s392_s18 = int_to_ptr.vmem [resolvable:$false] %s391_s18 }
  0x3e   : > { %s393_s21 = scalar_lea.vmem %s392_s18, 256  ;;  %p394_p5 = scmp.lt.s32.totalorder %s602_s24, %s392_s18 }
  0x3f   : > { %p389_p13 = pnand %p387_p12, %p373_p3  ;;  %p395_p10 = scmp.lt.s32.totalorder %s393_s21, %s386_s6 }
  0x41   : > { %p390_p0 = pneg %p389_p13  ;;  %p396_p1 = por %p395_p10, %p394_p5 }
  0x43   : > { %p397_p2 = pnand %p396_p1, %p390_p0 }
  0x45   : > { %400 = shalt.err (!%p397_p2)
}
  0x46   : > { %301 = dma.hbm_to_vmem [thread:$0]  (!%p598_p11), %s596_s19, 128, %s602_s24, %s122_s27  }
  0x47   : > { %p709_p7 = scmp.ne.s32.totalorder %s700_s17, 0 }
  0x48   : > { %p710_p3 = scmp.eq.s32.totalorder (!%p709_p7), %s512_s13, 0 }
  0x49   : > { %141 = sbr.rel (%p709_p7) target bundleno = 110 (0x6e), region = 28 }
  0x50   : > { %446 = dma.done.wait (%p710_p3), [#allocation3], 128   ;;  %p711_p4 = pmov %p710_p3 }
  0x51   : > { %s636_s22 = sand.u32 1, %s463_s10   ;;  %p712_p6 = scmp.ne.s32.totalorder %s698_s15, 0 }
  0x52   : > { %448 = vsyncadd (%p711_p4), [#allocation3], 4294967168  ;;  %s280_s25 = sshll.u32 %s636_s22, 3  ;;  %s148_s23 = scalar_lea.sflag [#allocation6], %s636_s22 }
  0x53   : > { %s151_s26 = scalar_lea.vmem [#allocation5], %s280_s25 }
  0x54   : > { %450 = dma.done.wait (%p712_p6), %s148_s23, 128  }
  0x55   : > { %452 = vsyncadd (%p712_p6), %s148_s23, 4294967168  ;;  %s171_s17 = scalar_lea.vmem [#allocation7], %s280_s25  ;;  %s283_s24 = sshll.u32 %s512_s13, 7  ;;  %v172_v0 = vld [vmem:[#allocation2] sm:$0xff]  ;;  %v173_v1 = vld [vmem:[%s151_s26] sm:$0xff] }
  0x56   : > { %s190_s19 = sshll.u32 %s171_s17, 4  ;;  %v174_v2 = vadd.f32 %v173_v1, %v172_v0  ;;  %s650_s29 = scalar_lea.hbm %s694_s2, %s283_s24  ;;  %s645_s19 = int_to_ptr.vmem [resolvable:$true] %s190_s19 }
  0x57   : > { %s177_s15 = scalar_lea.sflag [#allocation4], %s636_s22  ;;  %s401_s30 = scalar_lea.vmem %s645_s19, 128 }
  0x58   : > { %175 = vst [vmem:[%s171_s17] sm:$0xff] %v174_v2  ;;  %p402_p11 = scmp.ne.s32.totalorder %s645_s19, %s401_s30  ;;  %s475_s13 = smov [#allocation7]  }
  0x59   : > { %s405_s3 = sshll.u32 %s475_s13, 4  ;;  %s406_s3 = int_to_ptr.vmem [resolvable:$false] %s405_s3 }
  0x5a   : > { %p403_p9 = pnand %p402_p11, %p583_p8  ;;  %s407_s4 = scalar_lea.vmem %s406_s3, 256 }
  0x5b   : > { %p408_p13 = scmp.lt.s32.totalorder %s645_s19, %s406_s3  ;;  %p409_p0 = scmp.lt.s32.totalorder %s407_s4, %s401_s30 }
  0x5c   : > { %p404_p12 = pneg %p403_p9 }
  0x5d   : > { %p410_p5 = por %p409_p0, %p408_p13 }
  0x5f   : > { %p411_p10 = pnand %p410_p5, %p404_p12 }
  0x61   : > { %414 = shalt.err (!%p411_p10)
}
  0x62   : > { %s415_s5 = scalar_lea.hbm %s650_s29, 128  ;;  %s419_s18 = scalar_lea.hbm %s694_s2, 256 }
  0x63   : > { %p416_p1 = scmp.ne.s32.totalorder %s650_s29, %s415_s5  ;;  %p420_p3 = scmp.lt.u32.totalorder %s650_s29, %s694_s2 }
  0x64   : > { %p421_p4 = scmp.lt.u32.totalorder %s419_s18, %s415_s5  ;;  %p423_p11 = scmp.lt.u32.totalorder %s415_s5, %s650_s29 }
  0x65   : > { %p417_p2 = pnand %p416_p1, %p583_p8 }
  0x66   : > { %p422_p6 = por %p421_p4, %p420_p3 }
  0x67   : > { %p418_p7 = pneg %p417_p2 }
  0x68   : > { %p424_p9 = por %p423_p11, %p422_p6 }
  0x6a   : > { %p425_p12 = pnand %p424_p9, %p418_p7 }
  0x6c   : > { %428 = shalt.err (!%p425_p12)
}
  0x6d   : > { %292 = dma.vmem_to_hbm [thread:$0]  (%p583_p8), %s645_s19, 128, %s650_s29, %s177_s15  }
  0x6e PF: > { %s202_s25 = sand.u32 1, %s459_s9   ;;  %p713_p13 = scmp.ne.s32.totalorder %s699_s16, 0 }
  0x6f   : > { %p714_p0 = scmp.ge.s32.totalorder %s471_s12, 2  ;;  %s203_s23 = scalar_lea.sflag [#allocation4], %s202_s25 }
  0x71   : > { %p303_p5 = pnand %p714_p0, %p713_p13 }
  0x73   : > { %454 = dma.done.wait (!%p303_p5), %s203_s23, 128  }
  0x74   : > { %456 = vsyncadd (!%p303_p5), %s203_s23, 4294967168  ;;  %p16_p10 = scmp.ge.s32.totalorder %s539_s20, 4   ;;  %s715_s9 = smov %s463_s10 }
  0x75   : > { %s716_s10 = smov %s467_s11  ;;  %s717_s11 = smov %s575_s7 }
  0x76   : > { %s718_s12 = smov %s539_s20  ;;  %18 = sbr.rel (!%p16_p10) target bundleno = 6 (0x6), region = 78 }
  0x7d   :  { %208 = vsyncpa [#allocation3], 1 }
  0x7e   :  { %210 = vsyncpa [#allocation3 + $0x1], 1 }
  0x7f   :  { %211 = vsyncpa [#allocation6], 1 }
  0x80   :  { %213 = vsyncpa [#allocation6 + $0x1], 1 }
  0x81   :  { %214 = vsyncpa [#allocation4], 1 }
  0x82   :  { %216 = vsyncpa [#allocation4 + $0x1], 1 }

// kernel: tpu_custom_call.1
= control target key start
LH: loop header
LB: loop body
LE: loop exit
PB: predicated region body
PF: predicated region fallthrough
CT: control target
= control target key end

     0   :  { %9 = vsyncpa [#allocation3], 0  ;;  %s4118_s0 = inlined_call_operand.hbm [shape: bf16[352,128], index: 0, kind: input, shape index: {}]   ;;  %s4119_s1 = inlined_call_operand.vmem [shape: bf16[3,128,128], index: 1, kind: input, shape index: {}]   ;;  %s4120_s2 = inlined_call_operand.vmem [shape: f32[320,1], index: 2, kind: input, shape index: {}]   ;;  %s4121_s3 = inlined_call_operand.hbm [shape: bf16[320,128], index: 3, kind: input, shape index: {}]   ;;  %s4122_s4 = inlined_call_operand.hbm [shape: bf16[320,128], index: 4, kind: output, shape index: {}]  }
   0x1   :  { %10 = vsyncpa [#allocation6], 0 }
   0x2   :  { %11 = vsyncpa [#allocation4], 0  ;;  %s2990_s15 = smov [#allocation2]   ;;  %s2918_s19 = scalar_lea.hbm %s4118_s0, 2816 }
   0x3   :  { %s17_s16 = sshll.u32 %s2990_s15, 4  ;;  %p2919_p0 = scmp.ne.s32.totalorder %s4118_s0, %s2918_s19  ;;  %s18_s16 = int_to_ptr.vmem [resolvable:$true] %s17_s16 }
   0x4   :  { %p2922_p1 = scmp.lt.u32.totalorder %s2918_s19, %s4118_s0 }
   0x6   :  { %p2924_p2 = pnand %p2922_p1, %p2919_p0 }
   0x8   :  { %2927 = shalt.err (!%p2924_p2)
}
   0x9   :  { %s2928_s24 = scalar_lea.vmem %s18_s16, 2816  ;;  %p2933_p4 = scmp.lt.s32.totalorder %s18_s16, %s18_s16 }
   0xa   :  { %p2929_p3 = scmp.ne.s32.totalorder %s18_s16, %s2928_s24  ;;  %p2934_p5 = scmp.lt.s32.totalorder %s2928_s24, %s2928_s24 }
   0xc   :  { %p2935_p6 = por %p2934_p5, %p2933_p4 }
   0xe   :  { %p2936_p7 = pnand %p2935_p6, %p2929_p3 }
  0x10   :  { %2939 = shalt.err (!%p2936_p7)
}
  0x11   :  { %s2991_s25 = smov 64   ;;  %s2992_s26 = smov 4  }
  0x12   :  { %23 = dma.hbm_to_vmem [thread:$0]  %s4118_s0, 2816, %s18_s16, [#allocation3], %s2991_s25, %s2991_s25, %s2992_s26  }
  0x13   :  { %s2993_s29 = smov [#allocation5]   ;;  %s2940_s7 = scalar_lea.hbm %s4121_s3, 2560 }
  0x14   :  { %s33_s30 = sshll.u32 %s2993_s29, 4  ;;  %p2941_p8 = scmp.ne.s32.totalorder %s4121_s3, %s2940_s7  ;;  %s34_s30 = int_to_ptr.vmem [resolvable:$true] %s33_s30 }
  0x15   :  { %p2944_p9 = scmp.lt.u32.totalorder %s2940_s7, %s4121_s3 }
  0x17   :  { %p2946_p10 = pnand %p2944_p9, %p2941_p8 }
  0x19   :  { %2949 = shalt.err (!%p2946_p10)
}
  0x1a   :  { %s2950_s12 = scalar_lea.vmem %s34_s30, 2560  ;;  %p2955_p12 = scmp.lt.s32.totalorder %s34_s30, %s34_s30 }
  0x1b   :  { %p2951_p11 = scmp.ne.s32.totalorder %s34_s30, %s2950_s12  ;;  %p2956_p13 = scmp.lt.s32.totalorder %s2950_s12, %s2950_s12 }
  0x1d   :  { %p2957_p0 = por %p2956_p13, %p2955_p12 }
  0x1f   :  { %p2958_p1 = pnand %p2957_p0, %p2951_p11 }
  0x21   :  { %2961 = shalt.err (!%p2958_p1)
}
  0x22   :  { %39 = dma.hbm_to_vmem [thread:$0]  %s4121_s3, 2560, %s34_s30, [#allocation6], %s2991_s25, %s2991_s25, %s2992_s26  }
  0x23   :  { %2984 = dma.done.wait [#allocation3], 2816  }
  0x24   :  { %2985 = vsyncadd [#allocation3], 4294964480 }
  0x25   :  { %2986 = dma.done.wait [#allocation6], 2560  }
  0x26   :  { %2987 = vsyncadd [#allocation6], 4294964736  ;;  %v2994_v0 = vmov 0   ;;  %v2851_v1 = vld [vmem:[%s4119_s1 + $0x40] sm:$0xff]   ;;  %v2853_v3 = vld [vmem:[%s4119_s1 + $0x48] sm:$0xff]  }
  0x27   :  { %2849 = vset.pattern.permute.xlu0 %v2994_v0  ;;  %2850 = vset.pattern.permute.xlu1 %v2994_v0  ;;  %v2852_v2 = vld [vmem:[%s4119_s1] sm:$0xff]   ;;  %v2854_v4 = vld [vmem:[%s4119_s1 + $0x8] sm:$0xff]   ;;  %v2855_v5 = vld [vmem:[%s4119_s1 + $0x50] sm:$0xff]  }
  0x28   :  { %2579 = vmatprep.subr.bf16.mxu1 %v2851_v1  ;;  %2635 = vmatprep.subr.bf16.mxu0 %v2852_v2  ;;  %v3069_v6 = vld [vmem:[%s4119_s1 + $0x10] sm:$0xff]   ;;  %v2857_v7 = vld [vmem:[%s4119_s1 + $0x58] sm:$0xff]   ;;  %v2859_v9 = vld [vmem:[%s4119_s1 + $0x60] sm:$0xff]  }
  0x29   :  { %2580 = vmatpush3.bf16.msra.mxu1 %v2851_v1  ;;  %2636 = vmatpush3.bf16.msra.mxu0 %v2852_v2  ;;  %v3078_v8 = vld [vmem:[%s4119_s1 + $0x18] sm:$0xff]   ;;  %v3088_v10 = vld [vmem:[%s4119_s1 + $0x20] sm:$0xff]   ;;  %v2861_v11 = vld [vmem:[%s4119_s1 + $0x68] sm:$0xff]  }
  0x2a   :  { %2581 = vmatprep.subr.bf16.mxu1 %v2853_v3  ;;  %2637 = vmatprep.subr.bf16.mxu0 %v2854_v4  ;;  %v3096_v12 = vld [vmem:[%s4119_s1 + $0x28] sm:$0xff]   ;;  %v2868_v14 = vld [vmem:[#allocation2] sm:$0xff]   ;;  %v2863_v15 = vld [vmem:[%s4119_s1 + $0x70] sm:$0xff]  }
  0x2b   :  { %v2867_v13 = vld [vmem:[#allocation2 + $0x8] sm:$0xff]   ;;  %2651 = vmatprep.mubr.bf16.mxu0 %v2868_v14  ;;  %v3108_v16 = vld [vmem:[%s4119_s1 + $0x30] sm:$0xff]   ;;  %v2865_v17 = vld [vmem:[%s4119_s1 + $0x78] sm:$0xff]  }
  0x2c   :  { %2595 = vmatprep.mubr.bf16.mxu1 %v2867_v13  ;;  %v3118_v18 = vld [vmem:[%s4119_s1 + $0x38] sm:$0xff]   ;;  %v2870_v19 = vld [vmem:[%s4119_s1 + $0x80] sm:$0xff]   ;;  %v2869_v20 = vld [vmem:[#allocation2 + $0x10] sm:$0xff]  }
  0x2d   :  { %2582 = vmatpush3.bf16.msra.mxu1 %v2853_v3  ;;  %2638 = vmatpush3.bf16.msra.mxu0 %v2854_v4  ;;  %v2872_v21 = vld [vmem:[#allocation2 + $0x18] sm:$0xff]   ;;  %v2871_v22 = vld [vmem:[%s4119_s1 + $0x88] sm:$0xff]   ;;  %v2874_v23 = vld [vmem:[%s4119_s1 + $0x90] sm:$0xff]  }
  0x2e   :  { %2583 = vmatprep.subr.bf16.mxu1 %v2855_v5  ;;  %2639 = vmatprep.subr.bf16.mxu0 %v3069_v6  ;;  %v2873_v24 = vld [vmem:[#allocation2 + $0x20] sm:$0xff]   ;;  %v2875_v25 = vld [vmem:[#allocation2 + $0x28] sm:$0xff]   ;;  %v2876_v26 = vld [vmem:[%s4119_s1 + $0x98] sm:$0xff]  }
  0x2f   :  { %v1188_v27 = vld [vmem:[%s4120_s2] sm:$0xff]  ;;  %v1190_v28 = vld [vmem:[%s4120_s2 + $0x10] sm:$0xff]  ;;  %v2879_v31 = vld [vmem:[#allocation2 + $0x38] sm:$0xff]  }
  0x30   :  { %v2878_v29 = vld [vmem:[%s4119_s1 + $0xa0] sm:$0xff]   ;;  %v2877_v30 = vld [vmem:[#allocation2 + $0x30] sm:$0xff]   ;;  %1230 = vperm.xlu0 %2849, %v1188_v27   ;;  %1240 = vperm.xlu1 %2850, %v1190_v28   ;;  %v2881_v32 = vld [vmem:[%s4119_s1 + $0xa8] sm:$0xff]  }
  0x31   :  { %2584 = vmatpush3.bf16.msra.mxu1 %v2855_v5  ;;  %2640 = vmatpush3.bf16.msra.mxu0 %v3069_v6  ;;  %v1189_v33 = vld [vmem:[%s4120_s2 + $0x8] sm:$0xff]  ;;  %v1191_v34 = vld [vmem:[%s4120_s2 + $0x18] sm:$0xff]  ;;  %v2882_v35 = vld [vmem:[%s4119_s1 + $0xb0] sm:$0xff]  }
  0x32   :  { %2585 = vmatprep.subr.bf16.mxu1 %v2857_v7  ;;  %2641 = vmatprep.subr.bf16.mxu0 %v3078_v8  ;;  %v2880_v36 = vld [vmem:[#allocation2 + $0x40] sm:$0xff]   ;;  %v2883_v37 = vld [vmem:[#allocation2 + $0x48] sm:$0xff]   ;;  %v2885_v39 = vld [vmem:[%s4119_s1 + $0xb8] sm:$0xff]  }
  0x33   :  { %v1192_v38 = vld [vmem:[%s4120_s2 + $0x20] sm:$0xff]  ;;  %v1193_v40 = vld [vmem:[%s4120_s2 + $0x28] sm:$0xff]  ;;  %v1194_v41 = vld [vmem:[%s4120_s2 + $0x30] sm:$0xff] }
  0x34   :  { %1235 = vperm.xlu0 %2849, %v1189_v33   ;;  %1245 = vperm.xlu1 %2850, %v1191_v34   ;;  %v3177_v42 = vld [vmem:[#allocation2 + $0x50] sm:$0xff]   ;;  %v3179_v43 = vld [vmem:[#allocation2 + $0x58] sm:$0xff]   ;;  %v1196_v46 = vld [vmem:[%s4120_s2 + $0x40] sm:$0xff] }
  0x35   :  { %2586 = vmatpush3.bf16.msra.mxu1 %v2857_v7  ;;  %2642 = vmatpush3.bf16.msra.mxu0 %v3078_v8  ;;  %v1195_v44 = vld [vmem:[%s4120_s2 + $0x38] sm:$0xff]  ;;  %v2887_v45 = vld [vmem:[#allocation2 + $0x10] sm:$0xff]   ;;  %v1197_v47 = vld [vmem:[%s4120_s2 + $0x48] sm:$0xff] }
  0x36   :  { %2587 = vmatprep.subr.bf16.mxu1 %v2859_v9  ;;  %2643 = vmatprep.subr.bf16.mxu0 %v3088_v10  ;;  %v3194_v48 = vld [vmem:[#allocation2 + $0x60] sm:$0xff]   ;;  %v2889_v49 = vld [vmem:[#allocation2 + $0x18] sm:$0xff]   ;;  %v1198_v50 = vld [vmem:[%s4120_s2 + $0x50] sm:$0xff] }
  0x37   :  { %v3200_v51 = vld [vmem:[#allocation2 + $0x68] sm:$0xff]   ;;  %v1199_v52 = vld [vmem:[%s4120_s2 + $0x58] sm:$0xff]  ;;  %v2891_v53 = vld [vmem:[#allocation2 + $0x20] sm:$0xff]  }
  0x38   :  { %1250 = vperm.xlu0 %2849, %v1192_v38   ;;  %1255 = vperm.xlu1 %2850, %v1193_v40   ;;  %v1200_v54 = vld [vmem:[%s4120_s2 + $0x60] sm:$0xff]  ;;  %v1201_v55 = vld [vmem:[%s4120_s2 + $0x68] sm:$0xff]  ;;  %v1202_v56 = vld [vmem:[%s4120_s2 + $0x70] sm:$0xff] }
  0x39   :  { %2588 = vmatpush3.bf16.msra.mxu1 %v2859_v9  ;;  %2644 = vmatpush3.bf16.msra.mxu0 %v3088_v10  ;;  %v3216_v57 = vld [vmem:[#allocation2 + $0x70] sm:$0xff]   ;;  %v2893_v58 = vld [vmem:[#allocation2 + $0x28] sm:$0xff]   ;;  %v3218_v59 = vld [vmem:[#allocation2 + $0x78] sm:$0xff]  }
  0x3a   :  { %2589 = vmatprep.subr.bf16.mxu1 %v2861_v11  ;;  %2645 = vmatprep.subr.bf16.mxu0 %v3096_v12  ;;  %v1203_v60 = vld [vmem:[%s4120_s2 + $0x78] sm:$0xff]  ;;  %v2895_v61 = vld [vmem:[#allocation2 + $0x30] sm:$0xff]   ;;  %v1204_v62 = vld [vmem:[%s4120_s2 + $0x80] sm:$0xff] }
  0x3b   :  { %v1205_v63 = vld [vmem:[%s4120_s2 + $0x88] sm:$0xff]  ;;  %v1206_v0 = vld [vmem:[%s4120_s2 + $0x90] sm:$0xff]  ;;  %v3234_v1 = vld [vmem:[#allocation2 + $0x80] sm:$0xff]  }
  0x3c   :  { %1260 = vperm.xlu0 %2849, %v1194_v41   ;;  %1265 = vperm.xlu1 %2850, %v1195_v44   ;;  %v3236_v3 = vld [vmem:[#allocation2 + $0x88] sm:$0xff]   ;;  %v2899_v5 = vld [vmem:[#allocation2 + $0x40] sm:$0xff]   ;;  %v3252_v9 = vld [vmem:[#allocation2 + $0x90] sm:$0xff]  }
  0x3d   :  { %2590 = vmatpush3.bf16.msra.mxu1 %v2861_v11  ;;  %2646 = vmatpush3.bf16.msra.mxu0 %v3096_v12  ;;  %v1209_v7 = vld [vmem:[%s4120_s2 + $0xa8] sm:$0xff]  ;;  %v3254_v11 = vld [vmem:[#allocation2 + $0x98] sm:$0xff]   ;;  %v1212_v14 = vld [vmem:[%s4120_s2 + $0xc0] sm:$0xff] }
  0x3e   :  { %2591 = vmatprep.subr.bf16.mxu1 %v2863_v15  ;;  %2647 = vmatprep.subr.bf16.mxu0 %v3108_v16  ;;  %v1220_v27 = vld [vmem:[%s4120_s2 + $0x100] sm:$0xff]  ;;  %v1221_v28 = vld [vmem:[%s4120_s2 + $0x108] sm:$0xff]  ;;  %v2912_v38 = vld [vmem:[#allocation2 + $0x90] sm:$0xff]  }
  0x3f   :  { %v1224_v33 = vld [vmem:[%s4120_s2 + $0x120] sm:$0xff]  ;;  %v1225_v34 = vld [vmem:[%s4120_s2 + $0x128] sm:$0xff] }
  0x40   :  { %1270 = vperm.xlu0 %2849, %v1196_v46   ;;  %1275 = vperm.xlu1 %2850, %v1197_v47   ;;  %v2914_v40 = vld [vmem:[#allocation2 + $0xa0] sm:$0xff]   ;;  %v2915_v41 = vld [vmem:[#allocation2 + $0xa8] sm:$0xff]  }
  0x41   :  { %2592 = vmatpush3.bf16.msra.mxu1 %v2863_v15  ;;  %2648 = vmatpush3.bf16.msra.mxu0 %v3108_v16  ;;  %v1213_v15 = vld [vmem:[%s4120_s2 + $0xc8] sm:$0xff] }
  0x42   :  { %2593 = vmatprep.subr.bf16.mxu1 %v2865_v17  ;;  %2649 = vmatprep.subr.bf16.mxu0 %v3118_v18 }
  0x44   :  { %1280 = vperm.xlu0 %2849, %v1198_v50   ;;  %1285 = vperm.xlu1 %2850, %v1199_v52  }
  0x45   :  { %2594 = vmatpush3.bf16.msra.mxu1 %v2865_v17  ;;  %2650 = vmatpush3.bf16.msra.mxu0 %v3118_v18  ;;  %v2904_v17 = vld [vmem:[#allocation2 + $0xa0] sm:$0xff]  }
  0x46   :  { %2747 = vmatprep.subr.bf16.mxu1 %v2852_v2  ;;  %2691 = vmatprep.subr.bf16.mxu0 %v2870_v19 }
  0x48   :  { %2596 = vmatmul.mubr.bf16.vlgmr.msra.gmra.mrb[0].mxu1 %v2869_v20  ;;  %2652 = vmatmul.mubr.bf16.vlgmr.msra.gmra.mrb[0].mxu0 %v2867_v13  ;;  %v2903_v13 = vld [vmem:[#allocation2 + $0x50] sm:$0xff]  }
  0x49   :  { %2755 = vmatpush3.bf16.msra.mxu1 %v2852_v2  ;;  %2692 = vmatpush3.bf16.msra.mxu0 %v2870_v19  ;;  %v2897_v2 = vld [vmem:[#allocation2 + $0x38] sm:$0xff]  }
  0x4a   :  { %2599 = vmatprep.mubr.bf16.mxu1 %v2872_v21  ;;  %2693 = vmatprep.subr.bf16.mxu0 %v2871_v22  ;;  %v1215_v19 = vld [vmem:[%s4120_s2 + $0xd8] sm:$0xff] }
  0x4b   :  { %2655 = vmatprep.mubr.bf16.mxu0 %v2869_v20  ;;  %2748 = vmatprep.subr.bf16.mxu1 %v2854_v4  ;;  %v2906_v20 = vld [vmem:[#allocation2 + $0x60] sm:$0xff]  }
  0x4c   :  { %1290 = vperm.xlu0 %2849, %v1200_v54   ;;  %1295 = vperm.xlu1 %2850, %v1201_v55  }
  0x4d   :  { %2756 = vmatpush3.bf16.msra.mxu1 %v2854_v4  ;;  %2694 = vmatpush3.bf16.msra.mxu0 %v2871_v22  ;;  %v1207_v4 = vld [vmem:[%s4120_s2 + $0x98] sm:$0xff]  ;;  %v1217_v22 = vld [vmem:[%s4120_s2 + $0xe8] sm:$0xff] }
  0x4e   :  { %2749 = vmatprep.subr.bf16.mxu1 %v3069_v6  ;;  %2695 = vmatprep.subr.bf16.mxu0 %v2874_v23 }
  0x50   :  { %2600 = vmatmul.mubr.bf16.gmra.mrb[4].mxu1 %v2873_v24  ;;  %2656 = vmatmul.mubr.bf16.gmra.mrb[4].mxu0 %v2872_v21  ;;  %v1216_v21 = vld [vmem:[%s4120_s2 + $0xe0] sm:$0xff] }
  0x51   :  { %2603 = vmatprep.mubr.bf16.mxu1 %v2875_v25  ;;  %2696 = vmatpush3.bf16.msra.mxu0 %v2874_v23  ;;  %v1218_v23 = vld [vmem:[%s4120_s2 + $0xf0] sm:$0xff] }
  0x52   :  { %2659 = vmatprep.mubr.bf16.mxu0 %v2873_v24  ;;  %2697 = vmatprep.subr.bf16.mxu0 %v2876_v26  ;;  %v2907_v24 = vld [vmem:[#allocation2 + $0x68] sm:$0xff]  }
  0x53   :  { %2757 = vmatpush3.bf16.msra.mxu1 %v3069_v6  ;;  %1300 = vperm.xlu0 %2849, %v1202_v56   ;;  %v1208_v6 = vld [vmem:[%s4120_s2 + $0xa0] sm:$0xff] }
  0x54   :  { %2750 = vmatprep.subr.bf16.mxu1 %v3078_v8  ;;  %1305 = vperm.xlu1 %2850, %v1203_v60  }
  0x55   :  { %2698 = vmatpush3.bf16.msra.mxu0 %v2876_v26  ;;  %v2908_v26 = vld [vmem:[#allocation2 + $0x70] sm:$0xff]  }
  0x56   :  { %2699 = vmatprep.subr.bf16.mxu0 %v2878_v29 }
  0x57   :  { %2758 = vmatpush3.bf16.msra.mxu1 %v3078_v8  ;;  %1310 = vperm.xlu0 %2849, %v1204_v62   ;;  %v1210_v8 = vld [vmem:[%s4120_s2 + $0xb0] sm:$0xff] }
  0x58   :  { %2604 = vmatmul.mubr.bf16.gmra.mrb[8].mxu1 %v2877_v30  ;;  %2751 = vmatprep.subr.bf16.mxu1 %v3088_v10 }
  0x59   :  { %2660 = vmatmul.mubr.bf16.gmra.mrb[8].mxu0 %v2875_v25  ;;  %2607 = vmatprep.mubr.bf16.mxu1 %v2879_v31  ;;  %v1219_v25 = vld [vmem:[%s4120_s2 + $0xf8] sm:$0xff] }
  0x5a   :  { %2700 = vmatpush3.bf16.msra.mxu0 %v2878_v29  ;;  %2663 = vmatprep.mubr.bf16.mxu0 %v2877_v30  ;;  %v1222_v29 = vld [vmem:[%s4120_s2 + $0x110] sm:$0xff]  ;;  %v2909_v30 = vld [vmem:[#allocation2 + $0x78] sm:$0xff]  }
  0x5b   :  { %2701 = vmatprep.subr.bf16.mxu0 %v2881_v32  ;;  %2759 = vmatpush3.bf16.msra.mxu1 %v3088_v10  ;;  %v2901_v10 = vld [vmem:[#allocation2 + $0x48] sm:$0xff]  }
  0x5c   :  { %2752 = vmatprep.subr.bf16.mxu1 %v3096_v12  ;;  %1315 = vperm.xlu1 %2850, %v1205_v63  }
  0x5d   :  { %1320 = vperm.xlu0 %2849, %v1206_v0  }
  0x5e   :  { %2702 = vmatpush3.bf16.msra.mxu0 %v2881_v32  ;;  %v2910_v32 = vld [vmem:[#allocation2 + $0x80] sm:$0xff]  }
  0x5f   :  { %2703 = vmatprep.subr.bf16.mxu0 %v2882_v35  ;;  %2760 = vmatpush3.bf16.msra.mxu1 %v3096_v12  ;;  %v1211_v12 = vld [vmem:[%s4120_s2 + $0xb8] sm:$0xff] }
  0x60   :  { %2608 = vmatmul.mubr.bf16.gmra.mrb[12].mxu1 %v2880_v36  ;;  %2753 = vmatprep.subr.bf16.mxu1 %v3108_v16 }
  0x61   :  { %2664 = vmatmul.mubr.bf16.gmra.mrb[12].mxu0 %v2879_v31  ;;  %2611 = vmatprep.mubr.bf16.mxu1 %v2883_v37  ;;  %v1223_v31 = vld [vmem:[%s4120_s2 + $0x118] sm:$0xff] }
  0x62   :  { %2667 = vmatprep.mubr.bf16.mxu0 %v2880_v36  ;;  %2704 = vmatpush3.bf16.msra.mxu0 %v2882_v35  ;;  %v1226_v35 = vld [vmem:[%s4120_s2 + $0x130] sm:$0xff]  ;;  %v2911_v36 = vld [vmem:[#allocation2 + $0x88] sm:$0xff]  }
  0x63   :  { %2705 = vmatprep.subr.bf16.mxu0 %v2885_v39  ;;  %2761 = vmatpush3.bf16.msra.mxu1 %v3108_v16  ;;  %v1214_v16 = vld [vmem:[%s4120_s2 + $0xd0] sm:$0xff] }
  0x64   :  { %2754 = vmatprep.subr.bf16.mxu1 %v3118_v18  ;;  %1325 = vperm.xlu1 %2850, %v1207_v4  }
  0x65   :  { %1330 = vperm.xlu0 %2849, %v1208_v6  }
  0x66   :  { %2706 = vmatpush3.bf16.msra.mxu0 %v2885_v39  ;;  %v2913_v39 = vld [vmem:[#allocation2 + $0x98] sm:$0xff]  }
  0x67   :  { %2762 = vmatpush3.bf16.msra.mxu1 %v3118_v18  ;;  %v2905_v18 = vld [vmem:[#allocation2 + $0x58] sm:$0xff]  }
  0x68   :  { %2612 = vmatmul.mubr.bf16.gmra.mrb[16].mxu1 %v3177_v42  ;;  %1335 = vperm.xlu1 %2850, %v1209_v7  }
  0x69   :  { %2668 = vmatmul.mubr.bf16.gmra.mrb[16].mxu0 %v2883_v37  ;;  %2615 = vmatprep.mubr.bf16.mxu1 %v3179_v43  ;;  %v1227_v37 = vld [vmem:[%s4120_s2 + $0x138] sm:$0xff]  ;;  %s2995_s2 = smov [#allocation7]  }
  0x6a   :  { %2707 = vmatprep.mubr.bf16.mxu0 %v2887_v45  ;;  %1340 = vperm.xlu0 %2849, %v1210_v8   ;;  %s2087_s10 = sshll.u32 %s2995_s2, 4  ;;  %s2088_s10 = int_to_ptr.vmem [resolvable:$true] %s2087_s10 }
  0x6b   :  { %s2962_s11 = scalar_lea.vmem %s2088_s10, 2560  ;;  %p2967_p3 = scmp.lt.s32.totalorder %s2088_s10, %s2088_s10 }
  0x6c   :  { %1345 = vperm.xlu1 %2850, %v1211_v12   ;;  %p2963_p2 = scmp.ne.s32.totalorder %s2088_s10, %s2962_s11  ;;  %p2968_p4 = scmp.lt.s32.totalorder %s2962_s11, %s2962_s11 }
  0x6e   :  { %1350 = vperm.xlu0 %2849, %v1212_v14   ;;  %p2969_p5 = por %p2968_p4, %p2967_p3 }
  0x70   :  { %2616 = vmatmul.mubr.bf16.gmra.mrb[20].mxu1 %v3194_v48  ;;  %1355 = vperm.xlu1 %2850, %v1213_v15   ;;  %p2970_p6 = pnand %p2969_p5, %p2963_p2 }
  0x71   :  { %2708 = vmatmul.mubr.bf16.vlgmr.msra.gmra.mrb[0].mxu0 %v2889_v49  ;;  %2619 = vmatprep.mubr.bf16.mxu1 %v3200_v51 }
  0x72   :  { %2711 = vmatprep.mubr.bf16.mxu0 %v2891_v53  ;;  %1360 = vperm.xlu0 %2849, %v1214_v16  }
  0x74   :  { %1365 = vperm.xlu1 %2850, %v1215_v19  }
  0x76   :  { %1370 = vperm.xlu0 %2849, %v1216_v21  }
  0x78   :  { %2620 = vmatmul.mubr.bf16.gmra.mrb[24].mxu1 %v3216_v57  ;;  %1375 = vperm.xlu1 %2850, %v1217_v22  }
  0x79   :  { %2712 = vmatmul.mubr.bf16.gmra.mrb[4].mxu0 %v2893_v58  ;;  %2623 = vmatprep.mubr.bf16.mxu1 %v3218_v59 }
  0x7a   :  { %2715 = vmatprep.mubr.bf16.mxu0 %v2895_v61  ;;  %1380 = vperm.xlu0 %2849, %v1218_v23  }
  0x7c   :  { %1385 = vperm.xlu1 %2850, %v1219_v25  }
  0x7e   :  { %1390 = vperm.xlu0 %2849, %v1220_v27  }
  0x80   :  { %2624 = vmatmul.mubr.bf16.gmra.mrb[28].mxu1 %v3234_v1  ;;  %1395 = vperm.xlu1 %2850, %v1221_v28  }
  0x81   :  { %2716 = vmatmul.mubr.bf16.gmra.mrb[8].mxu0 %v2897_v2  ;;  %2627 = vmatprep.mubr.bf16.mxu1 %v3236_v3 }
  0x82   :  { %2719 = vmatprep.mubr.bf16.mxu0 %v2899_v5  ;;  %1400 = vperm.xlu0 %2849, %v1222_v29  }
  0x84   :  { %1405 = vperm.xlu1 %2850, %v1223_v31  }
  0x86   :  { %1410 = vperm.xlu0 %2849, %v1224_v33  }
  0x88   :  { %2628 = vmatmul.mubr.bf16.gmra.mrb[32].mxu1 %v3252_v9  ;;  %1415 = vperm.xlu1 %2850, %v1225_v34  }
  0x89   :  { %2720 = vmatmul.mubr.bf16.gmra.mrb[12].mxu0 %v2901_v10  ;;  %2631 = vmatprep.mubr.bf16.mxu1 %v3254_v11 }
  0x8a   :  { %2723 = vmatprep.mubr.bf16.mxu0 %v2903_v13  ;;  %1420 = vperm.xlu0 %2849, %v1226_v35  }
  0x8c   :  { %1425 = vperm.xlu1 %2850, %v1227_v37  }
  0x90   :  { %2632 = vmatmul.mubr.bf16.gmra.mrb[36].mxu1 %v2904_v17 }
  0x91   :  { %2724 = vmatmul.mubr.bf16.gmra.mrb[16].mxu0 %v2905_v18  ;;  %2671 = vmatprep.mubr.bf16.mxu1 %v3177_v42 }
  0x92   :  { %2727 = vmatprep.mubr.bf16.mxu0 %v2906_v20 }
  0x98   :  { %2672 = vmatmul.mubr.bf16.vlgmr.msra.gmra.mrb[20].mxu1 %v3179_v43 }
  0x99   :  { %2728 = vmatmul.mubr.bf16.gmra.mrb[20].mxu0 %v2907_v24  ;;  %2675 = vmatprep.mubr.bf16.mxu1 %v3194_v48 }
  0x9a   :  { %2731 = vmatprep.mubr.bf16.mxu0 %v2908_v26 }
  0xa0   :  { %2676 = vmatmul.mubr.bf16.gmra.mrb[24].mxu1 %v3200_v51 }
  0xa1   :  { %2732 = vmatmul.mubr.bf16.gmra.mrb[24].mxu0 %v2909_v30  ;;  %2679 = vmatprep.mubr.bf16.mxu1 %v3216_v57 }
  0xa2   :  { %2735 = vmatprep.mubr.bf16.mxu0 %v2910_v32 }
  0xa8   :  { %2680 = vmatmul.mubr.bf16.gmra.mrb[28].mxu1 %v3218_v59 }
  0xa9   :  { %2736 = vmatmul.mubr.bf16.gmra.mrb[28].mxu0 %v2911_v36  ;;  %2683 = vmatprep.mubr.bf16.mxu1 %v3234_v1 }
  0xaa   :  { %2739 = vmatprep.mubr.bf16.mxu0 %v2912_v38 }
  0xaf   :  { %v3319_v42 = vpop.permute.xlu0 %1230  ;;  %v3321_v44 = vpop.permute.xlu1 %1240 }
  0xb0   :  { %2684 = vmatmul.mubr.bf16.gmra.mrb[32].mxu1 %v3236_v3 }
  0xb1   :  { %2740 = vmatmul.mubr.bf16.gmra.mrb[32].mxu0 %v2913_v39  ;;  %2687 = vmatprep.mubr.bf16.mxu1 %v3252_v9 }
  0xb2   :  { %2743 = vmatprep.mubr.bf16.mxu0 %v2914_v40 }
  0xb3   :  { %v3323_v46 = vpop.permute.xlu0 %1235  ;;  %v3325_v49 = vpop.permute.xlu1 %1245 }
  0xb7   :  { %v3327_v50 = vpop.permute.xlu0 %1250  ;;  %v3329_v55 = vpop.permute.xlu1 %1255 }
  0xb8   :  { %2688 = vmatmul.mubr.bf16.gmra.mrb[36].mxu1 %v3254_v11 }
  0xb9   :  { %2744 = vmatmul.mubr.bf16.gmra.mrb[36].mxu0 %v2915_v41 }
  0xbb   :  { %v3331_v56 = vpop.permute.xlu0 %1260  ;;  %v3333_v60 = vpop.permute.xlu1 %1265 }
  0xbf   :  { %v3335_v62 = vpop.permute.xlu0 %1270  ;;  %v3339_v0 = vpop.permute.xlu1 %1275 }
  0xc0   :  { %4178 = vst [vmem:[#allocation11_spill] sm:$0xff] %v3339_v0 }
  0xc3   :  { %v3343_v2 = vpop.permute.xlu0 %1280  ;;  %v3349_v5 = vpop.permute.xlu1 %1285 }
  0xc4   :  { %4179 = vst [vmem:[#allocation12_spill] sm:$0xff] %v3343_v2  ;;  %4180 = vst [vmem:[#allocation13_spill] sm:$0xff] %v3349_v5 }
  0xcb   :  { %v3351_v6 = vpop.permute.xlu0 %1290  ;;  %v3361_v11 = vpop.permute.xlu1 %1295 }
  0xcc   :  { %4181 = vst [vmem:[#allocation14_spill] sm:$0xff] %v3351_v6  ;;  %4182 = vst [vmem:[#allocation15_spill] sm:$0xff] %v3361_v11 }
  0xd2   :  { %v3363_v12 = vpop.permute.xlu0 %1300 }
  0xd3   :  { %4183 = vst [vmem:[#allocation16_spill] sm:$0xff] %v3363_v12  ;;  %v3367_v16 = vpop.permute.xlu1 %1305 }
  0xd4   :  { %4184 = vst [vmem:[#allocation17_spill] sm:$0xff] %v3367_v16 }
  0xd6   :  { %v3371_v19 = vpop.permute.xlu0 %1310 }
  0xd7   :  { %4185 = vst [vmem:[#allocation18_spill] sm:$0xff] %v3371_v19 }
  0xdb   :  { %v3381_v25 = vpop.permute.xlu1 %1315 }
  0xdc   :  { %4186 = vst [vmem:[#allocation19_spill] sm:$0xff] %v3381_v25  ;;  %v3385_v29 = vpop.permute.xlu0 %1320 }
  0xdd   :  { %4187 = vst [vmem:[#allocation20_spill] sm:$0xff] %v3385_v29 }
  0xe3   :  { %v3399_v41 = vpop.permute.xlu1 %1325 }
  0xe4   :  { %4188 = vst [vmem:[#allocation21_spill] sm:$0xff] %v3399_v41 }
 0x11b   :  { %v2597_v43 = vpop.f32.mrb[0].mxu1 }
 0x11c   :  { %v324_v45 = vpop.f32.mrb[1].mxu1 }
 0x11d   :  { %v2598_v47 = vpop.f32.mrb[2].mxu1 }
 0x11e   :  { %v327_v48 = vpop.f32.mrb[3].mxu1 }
 0x123   :  { %v2601_v51 = vpop.f32.mrb[4].mxu1 }
 0x124   :  { %v340_v52 = vpop.f32.mrb[5].mxu1 }
 0x125   :  { %v2602_v53 = vpop.f32.mrb[6].mxu1 }
 0x126   :  { %v343_v54 = vpop.f32.mrb[7].mxu1 }
 0x12b   :  { %v2605_v57 = vpop.f32.mrb[8].mxu1 }
 0x12c   :  { %v356_v58 = vpop.f32.mrb[9].mxu1 }
 0x12d   :  { %v2606_v59 = vpop.f32.mrb[10].mxu1 }
 0x12e   :  { %v359_v61 = vpop.f32.mrb[11].mxu1 }
 0x133   :  { %v3337_v63 = vpop.f32.mrb[12].mxu1 }
 0x134   :  { %v3341_v1 = vpop.f32.mrb[13].mxu1 }
 0x135   :  { %v3345_v3 = vpop.f32.mrb[14].mxu1 }
 0x136   :  { %v3347_v4 = vpop.f32.mrb[15].mxu1 }
 0x13b   :  { %v3353_v7 = vpop.f32.mrb[16].mxu1 }
 0x13c   :  { %v3355_v8 = vpop.f32.mrb[17].mxu1 }
 0x13d   :  { %v3357_v9 = vpop.f32.mrb[18].mxu1 }
 0x13e   :  { %v3359_v10 = vpop.f32.mrb[19].mxu1 }
 0x144   :  { %v2709_v13 = vpop.f32.mrb[0].mxu0 }
 0x145   :  { %v3365_v14 = vadd.f32 %v2709_v13, %v2597_v43  ;;  %v989_v15 = vpop.f32.mrb[1].mxu0 }
 0x146   :  { %v3369_v17 = vadd.f32 %v989_v15, %v324_v45  ;;  %v2710_v18 = vpop.f32.mrb[2].mxu0 }
 0x147   :  { %v3373_v20 = vadd.f32 %v2710_v18, %v2598_v47  ;;  %v992_v21 = vpop.f32.mrb[3].mxu0  ;;  %v1430_v26 = vmul.f32 %v3365_v14, %v3321_v44  ;;  %v3403_v47 = vpop.permute.xlu0 %1330 }
 0x148   :  { %v3375_v22 = vadd.f32 %v992_v21, %v327_v48  ;;  %v1428_v23 = vmul.f32 %v3369_v17, %v3319_v42  ;;  %4189 = vst [vmem:[#allocation22_spill] sm:$0xff] %v3403_v47 }
 0x149   :  { %v1431_v32 = vmul.f32 %v3373_v20, %v3325_v49 }
 0x14a   :  { %v1429_v24 = vmul.f32 %v3375_v22, %v3323_v46 }
 0x14c   :  { %v1468_v27 = vadd.f32 %v1429_v24, %v1428_v23  ;;  %v2713_v28 = vpop.f32.mrb[4].mxu0 }
 0x14d   :  { %v3387_v30 = vadd.f32 %v2713_v28, %v2601_v51  ;;  %v1005_v31 = vpop.f32.mrb[5].mxu0 }
 0x14e   :  { %v1469_v33 = vadd.f32 %v1468_v27, %v1430_v26  ;;  %v3391_v34 = vadd.f32 %v1005_v31, %v340_v52  ;;  %v2714_v35 = vpop.f32.mrb[6].mxu0  ;;  %v3415_v26 = vpop.permute.xlu1 %1335 }
 0x14f   :  { %v3393_v36 = vadd.f32 %v2714_v35, %v2602_v53  ;;  %v1008_v37 = vpop.f32.mrb[7].mxu0  ;;  %v1434_v48 = vmul.f32 %v3387_v30, %v3331_v56  ;;  %4191 = vst [vmem:[#allocation24_spill] sm:$0xff] %v3415_v26 }
 0x150   :  { %v1432_v38 = vmul.f32 %v3391_v34, %v3327_v50  ;;  %v1470_v39 = vadd.f32 %v1469_v33, %v1431_v32  ;;  %v3397_v40 = vadd.f32 %v1008_v37, %v343_v54 }
 0x151   :  { %v1435_v54 = vmul.f32 %v3393_v36, %v3333_v60 }
 0x152   :  { %v1471_v43 = vadd.f32 %v1470_v39, %v1432_v38  ;;  %v1433_v45 = vmul.f32 %v3397_v40, %v3329_v55  ;;  %v3430_v39 = vpop.permute.xlu1 %1345 }
 0x153   :  { %4194 = vst [vmem:[#allocation27_spill] sm:$0xff] %v3430_v39 }
 0x154   :  { %v1472_v51 = vadd.f32 %v1471_v43, %v1433_v45  ;;  %v2717_v52 = vpop.f32.mrb[8].mxu0 }
 0x155   :  { %v3407_v53 = vadd.f32 %v2717_v52, %v2605_v57  ;;  %v1021_v13 = vpop.f32.mrb[9].mxu0  ;;  %v3421_v57 = vpop.permute.xlu0 %1340 }
 0x156   :  { %v1473_v15 = vadd.f32 %v1472_v51, %v1434_v48  ;;  %v3411_v18 = vadd.f32 %v1021_v13, %v356_v58  ;;  %v2718_v21 = vpop.f32.mrb[10].mxu0  ;;  %4192 = vst [vmem:[#allocation25_spill] sm:$0xff] %v3421_v57 }
 0x157   :  { %v3413_v23 = vadd.f32 %v2718_v21, %v2606_v59  ;;  %v1024_v24 = vpop.f32.mrb[11].mxu0  ;;  %v1438_v58 = vmul.f32 %v3407_v53, %v3343_v2 }
 0x158   :  { %v1436_v27 = vmul.f32 %v3411_v18, %v3335_v62  ;;  %v1474_v28 = vadd.f32 %v1473_v15, %v1435_v54  ;;  %v3419_v31 = vadd.f32 %v1024_v24, %v359_v61 }
 0x159   :  { %4190 = vst [vmem:[#allocation23_spill] sm:$0xff] %v3413_v23  ;;  %v1439_v61 = vmul.f32 %v3413_v23, %v3349_v5  ;;  %v3437_v51 = vpop.permute.xlu0 %1350 }
 0x15a   :  { %v1475_v32 = vadd.f32 %v1474_v28, %v1436_v27  ;;  %v1437_v33 = vmul.f32 %v3419_v31, %v3339_v0  ;;  %4196 = vst [vmem:[#allocation29_spill] sm:$0xff] %v3437_v51 }
 0x15c   :  { %v1476_v59 = vadd.f32 %v1475_v32, %v1437_v33  ;;  %v2721_v35 = vpop.f32.mrb[12].mxu0 }
 0x15d   :  { %v3428_v37 = vadd.f32 %v2721_v35, %v3337_v63  ;;  %v1037_v38 = vpop.f32.mrb[13].mxu0  ;;  %v3453_v32 = vpop.permute.xlu0 %1360 }
 0x15e   :  { %v1477_v43 = vadd.f32 %v1476_v59, %v1438_v58  ;;  %v3435_v45 = vadd.f32 %v1037_v38, %v3341_v1  ;;  %v2722_v48 = vpop.f32.mrb[14].mxu0  ;;  %v3449_v1 = vpop.permute.xlu1 %1355  ;;  %4200 = vst [vmem:[#allocation33_spill] sm:$0xff] %v3453_v32 }
 0x15f   :  { %4193 = vst [vmem:[#allocation26_spill] sm:$0xff] %v3428_v37  ;;  %v3440_v52 = vadd.f32 %v2722_v48, %v3345_v3  ;;  %v1040_v13 = vpop.f32.mrb[15].mxu0  ;;  %4199 = vst [vmem:[#allocation32_spill] sm:$0xff] %v3449_v1  ;;  %v1442_v27 = vmul.f32 %v3428_v37, %v3363_v12 }
 0x160   :  { %4195 = vst [vmem:[#allocation28_spill] sm:$0xff] %v3435_v45  ;;  %v1440_v63 = vmul.f32 %v3435_v45, %v3351_v6  ;;  %v1478_v54 = vadd.f32 %v1477_v43, %v1439_v61  ;;  %v3445_v15 = vadd.f32 %v1040_v13, %v3347_v4 }
 0x161   :  { %4197 = vst [vmem:[#allocation30_spill] sm:$0xff] %v3440_v52  ;;  %v1443_v4 = vmul.f32 %v3440_v52, %v3367_v16 }
 0x162   :  { %4198 = vst [vmem:[#allocation31_spill] sm:$0xff] %v3445_v15  ;;  %v1479_v21 = vadd.f32 %v1478_v54, %v1440_v63  ;;  %v1441_v24 = vmul.f32 %v3445_v15, %v3361_v11  ;;  %v3471_v63 = vpop.permute.xlu1 %1365 }
 0x163   :  { %4205 = vst [vmem:[#allocation38_spill] sm:$0xff] %v3471_v63 }
 0x164   :  { %v1480_v28 = vadd.f32 %v1479_v21, %v1441_v24  ;;  %v2725_v3 = vpop.f32.mrb[16].mxu0 }
 0x165   :  { %v3456_v33 = vadd.f32 %v2725_v3, %v3353_v7  ;;  %v1053_v58 = vpop.f32.mrb[17].mxu0 }
 0x166   :  { %v1481_v59 = vadd.f32 %v1480_v28, %v1442_v27  ;;  %v3461_v35 = vadd.f32 %v1053_v58, %v3355_v8  ;;  %v2726_v38 = vpop.f32.mrb[18].mxu0  ;;  %v3475_v8 = vpop.permute.xlu0 %1370 }
 0x167   :  { %4201 = vst [vmem:[#allocation34_spill] sm:$0xff] %v3456_v33  ;;  %v3464_v61 = vadd.f32 %v2726_v38, %v3357_v9  ;;  %v1056_v43 = vpop.f32.mrb[19].mxu0  ;;  %4206 = vst [vmem:[#allocation39_spill] sm:$0xff] %v3475_v8  ;;  %v1446_v9 = vmul.f32 %v3456_v33, %v3385_v29 }
 0x168   :  { %4202 = vst [vmem:[#allocation35_spill] sm:$0xff] %v3461_v35  ;;  %v1444_v48 = vmul.f32 %v3461_v35, %v3371_v19  ;;  %v1482_v13 = vadd.f32 %v1481_v59, %v1443_v4  ;;  %v3469_v7 = vadd.f32 %v1056_v43, %v3359_v10 }
 0x169   :  { %4203 = vst [vmem:[#allocation36_spill] sm:$0xff] %v3464_v61  ;;  %v1447_v59 = vmul.f32 %v3464_v61, %v3399_v41 }
 0x16a   :  { %4204 = vst [vmem:[#allocation37_spill] sm:$0xff] %v3469_v7  ;;  %v1483_v54 = vadd.f32 %v1482_v13, %v1444_v48  ;;  %v1445_v21 = vmul.f32 %v3469_v7, %v3381_v25 }
 0x16b   :  { %v2673_v24 = vpop.f32.mrb[20].mxu1 }
 0x16c   :  { %v1484_v27 = vadd.f32 %v1483_v54, %v1445_v21  ;;  %v2729_v28 = vpop.f32.mrb[20].mxu0  ;;  %v651_v3 = vpop.f32.mrb[21].mxu1 }
 0x16d   :  { %v3479_v58 = vadd.f32 %v2729_v28, %v2673_v24  ;;  %v1069_v4 = vpop.f32.mrb[21].mxu0  ;;  %v2674_v10 = vpop.f32.mrb[22].mxu1 }
 0x16e   :  { %v1485_v38 = vadd.f32 %v1484_v27, %v1446_v9  ;;  %v3483_v43 = vadd.f32 %v1069_v4, %v651_v3  ;;  %v2730_v48 = vpop.f32.mrb[22].mxu0  ;;  %v654_v13 = vpop.f32.mrb[23].mxu1 }
 0x16f   :  { %v3485_v25 = vadd.f32 %v2730_v48, %v2674_v10  ;;  %v1072_v19 = vpop.f32.mrb[23].mxu0  ;;  %v3491_v24 = vpop.permute.xlu1 %1375  ;;  %v1450_v3 = vmul.f32 %v3479_v58, %v3421_v57 }
 0x170   :  { %v1448_v54 = vmul.f32 %v3483_v43, %v3403_v47  ;;  %v1486_v21 = vadd.f32 %v1485_v38, %v1447_v59  ;;  %v3489_v29 = vadd.f32 %v1072_v19, %v654_v13  ;;  %4207 = vst [vmem:[#allocation40_spill] sm:$0xff] %v3491_v24  ;;  %v3495_v9 = vpop.permute.xlu0 %1380 }
 0x171   :  { %4208 = vst [vmem:[#allocation41_spill] sm:$0xff] %v3495_v9  ;;  %v1451_v38 = vmul.f32 %v3485_v25, %v3430_v39 }
 0x172   :  { %v1487_v28 = vadd.f32 %v1486_v21, %v1448_v54  ;;  %v1449_v41 = vmul.f32 %v3489_v29, %v3415_v26 }
 0x173   :  { %v2677_v27 = vpop.f32.mrb[24].mxu1 }
 0x174   :  { %v1488_v4 = vadd.f32 %v1487_v28, %v1449_v41  ;;  %v2733_v10 = vpop.f32.mrb[24].mxu0  ;;  %v667_v48 = vpop.f32.mrb[25].mxu1 }
 0x175   :  { %v3499_v61 = vadd.f32 %v2733_v10, %v2677_v27  ;;  %v1085_v59 = vpop.f32.mrb[25].mxu0  ;;  %v2678_v19 = vpop.f32.mrb[26].mxu1 }
 0x176   :  { %v1489_v13 = vadd.f32 %v1488_v4, %v1450_v3  ;;  %v3503_v54 = vadd.f32 %v1085_v59, %v667_v48  ;;  %v2734_v21 = vpop.f32.mrb[26].mxu0  ;;  %v670_v26 = vpop.f32.mrb[27].mxu1 }
 0x177   :  { %v3505_v47 = vadd.f32 %v2734_v21, %v2678_v19  ;;  %v1088_v33 = vpop.f32.mrb[27].mxu0  ;;  %v3511_v27 = vpop.permute.xlu1 %1385  ;;  %v1454_v48 = vmul.f32 %v3499_v61, %v3453_v32 }
 0x178   :  { %v1452_v41 = vmul.f32 %v3503_v54, %v3437_v51  ;;  %v1490_v28 = vadd.f32 %v1489_v13, %v1451_v38  ;;  %v3509_v57 = vadd.f32 %v1088_v33, %v670_v26  ;;  %4209 = vst [vmem:[#allocation42_spill] sm:$0xff] %v3511_v27  ;;  %v3515_v3 = vpop.permute.xlu0 %1390 }
 0x179   :  { %4210 = vst [vmem:[#allocation43_spill] sm:$0xff] %v3515_v3  ;;  %v1455_v33 = vmul.f32 %v3505_v47, %v3471_v63 }
 0x17a   :  { %v1491_v10 = vadd.f32 %v1490_v28, %v1452_v41  ;;  %v1453_v39 = vmul.f32 %v3509_v57, %v3449_v1 }
 0x17b   :  { %v2681_v4 = vpop.f32.mrb[28].mxu1 }
 0x17c   :  { %v1492_v59 = vadd.f32 %v1491_v10, %v1453_v39  ;;  %v2737_v19 = vpop.f32.mrb[28].mxu0  ;;  %v683_v21 = vpop.f32.mrb[29].mxu1 }
 0x17d   :  { %v3519_v16 = vadd.f32 %v2737_v19, %v2681_v4  ;;  %v1101_v38 = vpop.f32.mrb[29].mxu0  ;;  %v2682_v26 = vpop.f32.mrb[30].mxu1 }
 0x17e   :  { %v1493_v13 = vadd.f32 %v1492_v59, %v1454_v48  ;;  %v3523_v41 = vadd.f32 %v1101_v38, %v683_v21  ;;  %v2738_v28 = vpop.f32.mrb[30].mxu0  ;;  %v686_v1 = vpop.f32.mrb[31].mxu1 }
 0x17f   :  { %v3525_v51 = vadd.f32 %v2738_v28, %v2682_v26  ;;  %v1104_v7 = vpop.f32.mrb[31].mxu0  ;;  %v3531_v4 = vpop.permute.xlu1 %1395  ;;  %v1458_v21 = vmul.f32 %v3519_v16, %v3495_v9 }
 0x180   :  { %v1456_v39 = vmul.f32 %v3523_v41, %v3475_v8  ;;  %v1494_v10 = vadd.f32 %v1493_v13, %v1455_v33  ;;  %v3529_v32 = vadd.f32 %v1104_v7, %v686_v1  ;;  %4211 = vst [vmem:[#allocation44_spill] sm:$0xff] %v3531_v4  ;;  %v3535_v48 = vpop.permute.xlu0 %1400 }
 0x181   :  { %4212 = vst [vmem:[#allocation45_spill] sm:$0xff] %v3535_v48  ;;  %v1459_v7 = vmul.f32 %v3525_v51, %v3511_v27 }
 0x182   :  { %v1495_v19 = vadd.f32 %v1494_v10, %v1456_v39  ;;  %v1457_v63 = vmul.f32 %v3529_v32, %v3491_v24 }
 0x183   :  { %v2685_v59 = vpop.f32.mrb[32].mxu1 }
 0x184   :  { %v1496_v38 = vadd.f32 %v1495_v19, %v1457_v63  ;;  %v2741_v26 = vpop.f32.mrb[32].mxu0  ;;  %v699_v28 = vpop.f32.mrb[33].mxu1 }
 0x185   :  { %v3539_v12 = vadd.f32 %v2741_v26, %v2685_v59  ;;  %v1117_v33 = vpop.f32.mrb[33].mxu0  ;;  %v2686_v1 = vpop.f32.mrb[34].mxu1 }
 0x186   :  { %v1497_v13 = vadd.f32 %v1496_v38, %v1458_v21  ;;  %v2796_v39 = vadd.f32 %v1117_v33, %v699_v28  ;;  %v2742_v10 = vpop.f32.mrb[34].mxu0  ;;  %v702_v24 = vpop.f32.mrb[35].mxu1 }
 0x187   :  { %v2797_v8 = vadd.f32 %v2742_v10, %v2686_v1  ;;  %v1120_v35 = vpop.f32.mrb[35].mxu0  ;;  %v3544_v63 = vpop.permute.xlu1 %1405  ;;  %v1462_v21 = vmul.f32 %v3539_v12, %v3535_v48 }
 0x188   :  { %v1460_v11 = vmul.f32 %v2796_v39, %v3515_v3  ;;  %v1498_v52 = vadd.f32 %v1497_v13, %v1459_v7  ;;  %v2798_v9 = vadd.f32 %v1120_v35, %v702_v24  ;;  %4213 = vst [vmem:[#allocation46_spill] sm:$0xff] %v3544_v63  ;;  %v3547_v26 = vpop.permute.xlu0 %1410 }
 0x189   :  { %v1463_v7 = vmul.f32 %v2797_v8, %v3544_v63 }
 0x18a   :  { %v1499_v19 = vadd.f32 %v1498_v52, %v1460_v11  ;;  %v1461_v59 = vmul.f32 %v2798_v9, %v3531_v4 }
 0x18b   :  { %v2689_v6 = vpop.f32.mrb[36].mxu1  ;;  %v3552_v52 = vpop.permute.xlu1 %1415 }
 0x18c   :  { %v1500_v38 = vadd.f32 %v1499_v19, %v1461_v59  ;;  %v2745_v28 = vpop.f32.mrb[36].mxu0  ;;  %v715_v33 = vpop.f32.mrb[37].mxu1 }
 0x18d   :  { %v2799_v1 = vadd.f32 %v2745_v28, %v2689_v6  ;;  %v1133_v10 = vpop.f32.mrb[37].mxu0  ;;  %v2690_v27 = vpop.f32.mrb[38].mxu1 }
 0x18e   :  { %v1501_v35 = vadd.f32 %v1500_v38, %v1462_v21  ;;  %v2800_v24 = vadd.f32 %v1133_v10, %v715_v33  ;;  %v2746_v13 = vpop.f32.mrb[38].mxu0  ;;  %v718_v11 = vpop.f32.mrb[39].mxu1 }
 0x18f   :  { %v2801_v4 = vadd.f32 %v2746_v13, %v2690_v27  ;;  %v1136_v3 = vpop.f32.mrb[39].mxu0  ;;  %v1421_v6 = vpop.permute.xlu0 %1420 }
 0x190   :  { %v1464_v37 = vmul.f32 %v2800_v24, %v3547_v26  ;;  %v1502_v5 = vadd.f32 %v1501_v35, %v1463_v7  ;;  %v2802_v48 = vadd.f32 %v1136_v3, %v718_v11  ;;  %v1466_v28 = vmul.f32 %v2799_v1, %v1421_v6  ;;  %v1426_v2 = vpop.permute.xlu1 %1425 }
 0x191   :  { %v1467_v63 = vmul.f32 %v2801_v4, %v1426_v2 }
 0x192   :  { %v1503_v19 = vadd.f32 %v1502_v5, %v1464_v37  ;;  %v1465_v59 = vmul.f32 %v2802_v48, %v3552_v52 }
 0x194   :  { %v1504_v15 = vadd.f32 %v1503_v19, %v1465_v59 }
 0x196   :  { %v1505_v21 = vadd.f32 %v1504_v15, %v1466_v28 }
 0x198   :  { %v1506_v38 = vadd.f32 %v1505_v21, %v1467_v63 }
 0x19a   :  { %v1507_v33 = vrot.slane %v1506_v38, 4 }
 0x19c   :  { %v1508_v10 = vadd.f32 %v1507_v33, %v1506_v38 }
 0x19e   :  { %v1509_v45 = vrot.slane %v1508_v10, 2 }
 0x1a0   :  { %v1510_v0 = vadd.f32 %v1509_v45, %v1508_v10  ;;  %v4215_v10 = vld [vmem:[#allocation23_spill] sm:$0xff] }
 0x1a2   :  { %v1511_v27 = vrot.slane %v1510_v0, 1 }
 0x1a4   :  { %v1512_v13 = vadd.f32 %v1511_v27, %v1510_v0 }
 0x1a6   :  { %v3556_v23 = vmul.f32 0.0078125, %v1512_v13 }
 0x1a8   :  { %v3560_v5 = vsub.f32 %v3483_v43, %v3556_v23  ;;  %v3564_v37 = vsub.f32 %v3489_v29, %v3556_v23  ;;  %v3568_v15 = vsub.f32 %v3479_v58, %v3556_v23  ;;  %v3572_v3 = vsub.f32 %v3485_v25, %v3556_v23 }
 0x1a9   :  { %v3576_v0 = vsub.f32 %v3503_v54, %v3556_v23  ;;  %v3580_v45 = vsub.f32 %v3509_v57, %v3556_v23  ;;  %v3584_v29 = vsub.f32 %v3499_v61, %v3556_v23  ;;  %v3588_v58 = vsub.f32 %v3505_v47, %v3556_v23 }
 0x1aa   :  { %v3592_v25 = vsub.f32 %v3523_v41, %v3556_v23  ;;  %v3596_v43 = vsub.f32 %v3529_v32, %v3556_v23  ;;  %v3600_v57 = vsub.f32 %v3519_v16, %v3556_v23  ;;  %v3604_v61 = vsub.f32 %v3525_v51, %v3556_v23 }
 0x1ab   :  { %v3607_v54 = vsub.f32 %v2796_v39, %v3556_v23  ;;  %v3610_v47 = vsub.f32 %v2798_v9, %v3556_v23  ;;  %v3614_v41 = vsub.f32 %v3539_v12, %v3556_v23  ;;  %v3617_v32 = vsub.f32 %v2797_v8, %v3556_v23 }
 0x1ac   :  { %v3620_v16 = vsub.f32 %v2800_v24, %v3556_v23  ;;  %v3623_v63 = vsub.f32 %v2802_v48, %v3556_v23  ;;  %v3626_v51 = vsub.f32 %v2799_v1, %v3556_v23  ;;  %v3629_v39 = vsub.f32 %v2801_v4, %v3556_v23 }
 0x1ad   :  { %v3633_v9 = vsub.f32 %v3369_v17, %v3556_v23  ;;  %v3637_v12 = vsub.f32 %v3375_v22, %v3556_v23  ;;  %v3647_v1 = vsub.f32 %v3365_v14, %v3556_v23  ;;  %v3655_v22 = vsub.f32 %v3373_v20, %v3556_v23 }
 0x1ae   :  { %4214 = vst [vmem:[#allocation47_spill] sm:$0xff] %v3629_v39  ;;  %v3640_v8 = vmul.f32 %v3626_v51, %v1421_v6  ;;  %v3643_v48 = vmul.f32 %v3629_v39, %v1426_v2  ;;  %v3659_v7 = vsub.f32 %v3391_v34, %v3556_v23  ;;  %v3665_v24 = vsub.f32 %v3397_v40, %v3556_v23  ;;  %v4236_v39 = vld [vmem:[#allocation24_spill] sm:$0xff] }
 0x1af   :  { %v1554_v4 = vmul.f32 %v3633_v9, %v3319_v42  ;;  %v1555_v17 = vmul.f32 %v3637_v12, %v3323_v46  ;;  %v1556_v2 = vmul.f32 %v3647_v1, %v3321_v44  ;;  %v1557_v42 = vmul.f32 %v3655_v22, %v3325_v49 }
 0x1b0   :  { %v3671_v46 = vsub.f32 %v3387_v30, %v3556_v23  ;;  %v1558_v20 = vmul.f32 %v3659_v7, %v3327_v50  ;;  %v3677_v44 = vsub.f32 %v3393_v36, %v3556_v23  ;;  %v1559_v40 = vmul.f32 %v3665_v24, %v3329_v55 }
 0x1b1   :  { %v1594_v35 = vmul.f32 %v1554_v4, %v1554_v4  ;;  %v1595_v14 = vmul.f32 %v1555_v17, %v1555_v17  ;;  %v1596_v34 = vmul.f32 %v1556_v2, %v1556_v2  ;;  %v1597_v19 = vmul.f32 %v1557_v42, %v1557_v42  ;;  %v4217_v17 = vld [vmem:[#allocation28_spill] sm:$0xff]  ;;  %v4219_v42 = vld [vmem:[#allocation31_spill] sm:$0xff] }
 0x1b2   :  { %v3683_v49 = vsub.f32 %v3411_v18, %v3556_v23  ;;  %v1560_v30 = vmul.f32 %v3671_v46, %v3331_v56  ;;  %v1598_v6 = vmul.f32 %v1558_v20, %v1558_v20  ;;  %v3689_v28 = vsub.f32 %v3419_v31, %v3556_v23  ;;  %v4216_v31 = vld [vmem:[#allocation11_spill] sm:$0xff] }
 0x1b3   :  { %v1634_v11 = vadd.f32 %v1595_v14, %v1594_v35  ;;  %v1561_v36 = vmul.f32 %v3677_v44, %v3333_v60  ;;  %v1599_v21 = vmul.f32 %v1559_v40, %v1559_v40  ;;  %v3695_v38 = vsub.f32 %v3407_v53, %v3556_v23  ;;  %v4218_v53 = vld [vmem:[#allocation12_spill] sm:$0xff] }
 0x1b4   :  { %v1562_v18 = vmul.f32 %v3683_v49, %v3335_v62  ;;  %v1600_v33 = vmul.f32 %v1560_v30, %v1560_v30  ;;  %v3701_v27 = vsub.f32 %v4215_v10, %v3556_v23  ;;  %v1563_v13 = vmul.f32 %v3689_v28, %v4216_v31 }
 0x1b5   :  { %v1635_v59 = vadd.f32 %v1634_v11, %v1596_v34  ;;  %v1601_v4 = vmul.f32 %v1561_v36, %v1561_v36  ;;  %v3707_v2 = vsub.f32 %v4217_v17, %v3556_v23  ;;  %v1564_v35 = vmul.f32 %v3695_v38, %v4218_v53  ;;  %v4220_v34 = vld [vmem:[#allocation13_spill] sm:$0xff] }
 0x1b6   :  { %v1602_v14 = vmul.f32 %v1562_v18, %v1562_v18  ;;  %v3713_v20 = vsub.f32 %v4219_v42, %v3556_v23  ;;  %v1565_v11 = vmul.f32 %v3701_v27, %v4220_v34  ;;  %v1603_v40 = vmul.f32 %v1563_v13, %v1563_v13  ;;  %v4225_v13 = vld [vmem:[#allocation35_spill] sm:$0xff]  ;;  %v4228_v42 = vld [vmem:[#allocation17_spill] sm:$0xff] }
 0x1b7   :  { %v1636_v50 = vadd.f32 %v1635_v59, %v1597_v19  ;;  %v4221_v59 = vld [vmem:[#allocation26_spill] sm:$0xff]  ;;  %v1604_v36 = vmul.f32 %v1564_v35, %v1564_v35  ;;  %v4227_v35 = vld [vmem:[#allocation37_spill] sm:$0xff] }
 0x1b8   :  { %v3719_v30 = vsub.f32 %v4221_v59, %v3556_v23  ;;  %v1605_v10 = vmul.f32 %v1565_v11, %v1565_v11  ;;  %v4229_v11 = vld [vmem:[#allocation34_spill] sm:$0xff] }
 0x1b9   :  { %v1637_v55 = vadd.f32 %v1636_v50, %v1598_v6  ;;  %v4222_v6 = vld [vmem:[#allocation14_spill] sm:$0xff]  ;;  %v3743_v59 = vsub.f32 %v4229_v11, %v3556_v23 }
 0x1ba   :  { %v1566_v50 = vmul.f32 %v3707_v2, %v4222_v6  ;;  %v4230_v6 = vld [vmem:[#allocation18_spill] sm:$0xff] }
 0x1bb   :  { %v1638_v56 = vadd.f32 %v1637_v55, %v1599_v21  ;;  %v4223_v55 = vld [vmem:[#allocation30_spill] sm:$0xff] }
 0x1bc   :  { %v3725_v18 = vsub.f32 %v4223_v55, %v3556_v23  ;;  %v1606_v53 = vmul.f32 %v1566_v50, %v1566_v50  ;;  %v4231_v50 = vld [vmem:[#allocation36_spill] sm:$0xff] }
 0x1bd   :  { %v1639_v60 = vadd.f32 %v1638_v56, %v1600_v33  ;;  %v4224_v33 = vld [vmem:[#allocation15_spill] sm:$0xff] }
 0x1be   :  { %v1567_v56 = vmul.f32 %v3713_v20, %v4224_v33  ;;  %v1569_v34 = vmul.f32 %v3725_v18, %v4228_v42  ;;  %v3749_v33 = vsub.f32 %v4231_v50, %v3556_v23  ;;  %v4234_v42 = vld [vmem:[#allocation21_spill] sm:$0xff] }
 0x1bf   :  { %v1640_v62 = vadd.f32 %v1639_v60, %v1601_v4  ;;  %v3731_v4 = vsub.f32 %v4225_v13, %v3556_v23  ;;  %v4226_v60 = vld [vmem:[#allocation16_spill] sm:$0xff] }
 0x1c0   :  { %v1568_v17 = vmul.f32 %v3719_v30, %v4226_v60  ;;  %v1609_v13 = vmul.f32 %v1569_v34, %v1569_v34  ;;  %v1573_v11 = vmul.f32 %v3749_v33, %v4234_v42 }
 0x1c1   :  { %v1641_v19 = vadd.f32 %v1640_v62, %v1602_v14  ;;  %v3737_v62 = vsub.f32 %v4227_v35, %v3556_v23 }
 0x1c2   :  { %v1613_v34 = vmul.f32 %v1573_v11, %v1573_v11 }
 0x1c3   :  { %v1642_v21 = vadd.f32 %v1641_v19, %v1603_v40  ;;  %v1607_v40 = vmul.f32 %v1567_v56, %v1567_v56  ;;  %v4233_v56 = vld [vmem:[#allocation20_spill] sm:$0xff] }
 0x1c5   :  { %v1643_v31 = vadd.f32 %v1642_v21, %v1604_v36  ;;  %v1570_v36 = vmul.f32 %v3731_v4, %v4230_v6  ;;  %v1608_v21 = vmul.f32 %v1568_v17, %v1568_v17 }
 0x1c7   :  { %v1644_v14 = vadd.f32 %v1643_v31, %v1605_v10  ;;  %v4232_v10 = vld [vmem:[#allocation19_spill] sm:$0xff] }
 0x1c8   :  { %v1571_v31 = vmul.f32 %v3737_v62, %v4232_v10  ;;  %v1575_v10 = vmul.f32 %v3564_v37, %v4236_v39 }
 0x1c9   :  { %v1645_v19 = vadd.f32 %v1644_v14, %v1606_v53  ;;  %v1572_v53 = vmul.f32 %v3743_v59, %v4233_v56  ;;  %v1610_v14 = vmul.f32 %v1570_v36, %v1570_v36 }
 0x1ca   :  { %v1611_v6 = vmul.f32 %v1571_v31, %v1571_v31  ;;  %v1615_v31 = vmul.f32 %v1575_v10, %v1575_v10 }
 0x1cb   :  { %v1646_v55 = vadd.f32 %v1645_v19, %v1607_v40  ;;  %v4235_v40 = vld [vmem:[#allocation22_spill] sm:$0xff]  ;;  %v1612_v23 = vmul.f32 %v1572_v53, %v1572_v53 }
 0x1cc   :  { %v1574_v19 = vmul.f32 %v3560_v5, %v4235_v40 }
 0x1cd   :  { %v1647_v60 = vadd.f32 %v1646_v55, %v1608_v21  ;;  %v4237_v55 = vld [vmem:[#allocation25_spill] sm:$0xff] }
 0x1ce   :  { %v1576_v56 = vmul.f32 %v3568_v15, %v4237_v55  ;;  %v1614_v36 = vmul.f32 %v1574_v19, %v1574_v19 }
 0x1cf   :  { %v1648_v35 = vadd.f32 %v1647_v60, %v1609_v13  ;;  %v4238_v60 = vld [vmem:[#allocation27_spill] sm:$0xff] }
 0x1d0   :  { %v1577_v42 = vmul.f32 %v3572_v3, %v4238_v60  ;;  %v1616_v53 = vmul.f32 %v1576_v56, %v1576_v56 }
 0x1d1   :  { %v1649_v17 = vadd.f32 %v1648_v35, %v1610_v14  ;;  %v4239_v35 = vld [vmem:[#allocation29_spill] sm:$0xff] }
 0x1d2   :  { %v1578_v40 = vmul.f32 %v3576_v0, %v4239_v35  ;;  %v1617_v11 = vmul.f32 %v1577_v42, %v1577_v42 }
 0x1d3   :  { %v1650_v50 = vadd.f32 %v1649_v17, %v1611_v6  ;;  %v4240_v17 = vld [vmem:[#allocation32_spill] sm:$0xff] }
 0x1d4   :  { %v1579_v39 = vmul.f32 %v3580_v45, %v4240_v17  ;;  %v1618_v19 = vmul.f32 %v1578_v40, %v1578_v40 }
 0x1d5   :  { %v1651_v21 = vadd.f32 %v1650_v50, %v1612_v23  ;;  %v4241_v50 = vld [vmem:[#allocation33_spill] sm:$0xff] }
 0x1d6   :  { %v1580_v55 = vmul.f32 %v3584_v29, %v4241_v50  ;;  %v1619_v10 = vmul.f32 %v1579_v39, %v1579_v39 }
 0x1d7   :  { %v1652_v13 = vadd.f32 %v1651_v21, %v1613_v34  ;;  %v4242_v21 = vld [vmem:[#allocation38_spill] sm:$0xff] }
 0x1d8   :  { %v1581_v60 = vmul.f32 %v3588_v58, %v4242_v21  ;;  %v1620_v56 = vmul.f32 %v1580_v55, %v1580_v55 }
 0x1d9   :  { %v1653_v14 = vadd.f32 %v1652_v13, %v1614_v36  ;;  %v4243_v13 = vld [vmem:[#allocation39_spill] sm:$0xff] }
 0x1da   :  { %v1582_v35 = vmul.f32 %v3592_v25, %v4243_v13  ;;  %v1621_v42 = vmul.f32 %v1581_v60, %v1581_v60 }
 0x1db   :  { %v1654_v6 = vadd.f32 %v1653_v14, %v1615_v31  ;;  %v4244_v14 = vld [vmem:[#allocation40_spill] sm:$0xff] }
 0x1dc   :  { %v1583_v17 = vmul.f32 %v3596_v43, %v4244_v14  ;;  %v1622_v40 = vmul.f32 %v1582_v35, %v1582_v35 }
 0x1dd   :  { %v1655_v23 = vadd.f32 %v1654_v6, %v1616_v53  ;;  %v4245_v6 = vld [vmem:[#allocation41_spill] sm:$0xff] }
 0x1de   :  { %v1584_v50 = vmul.f32 %v3600_v57, %v4245_v6  ;;  %v1623_v39 = vmul.f32 %v1583_v17, %v1583_v17 }
 0x1df   :  { %v1656_v34 = vadd.f32 %v1655_v23, %v1617_v11  ;;  %v4246_v23 = vld [vmem:[#allocation42_spill] sm:$0xff] }
 0x1e0   :  { %v1585_v21 = vmul.f32 %v3604_v61, %v4246_v23  ;;  %v1624_v55 = vmul.f32 %v1584_v50, %v1584_v50 }
 0x1e1   :  { %v1657_v36 = vadd.f32 %v1656_v34, %v1618_v19  ;;  %v4247_v34 = vld [vmem:[#allocation43_spill] sm:$0xff] }
 0x1e2   :  { %v1586_v13 = vmul.f32 %v3607_v54, %v4247_v34  ;;  %v1625_v60 = vmul.f32 %v1585_v21, %v1585_v21 }
 0x1e3   :  { %v1658_v31 = vadd.f32 %v1657_v36, %v1619_v10  ;;  %v4248_v36 = vld [vmem:[#allocation44_spill] sm:$0xff] }
 0x1e4   :  { %v1587_v14 = vmul.f32 %v3610_v47, %v4248_v36  ;;  %v1626_v35 = vmul.f32 %v1586_v13, %v1586_v13 }
 0x1e5   :  { %v1659_v53 = vadd.f32 %v1658_v31, %v1620_v56  ;;  %v4249_v31 = vld [vmem:[#allocation45_spill] sm:$0xff] }
 0x1e6   :  { %v1588_v6 = vmul.f32 %v3614_v41, %v4249_v31  ;;  %v1627_v17 = vmul.f32 %v1587_v14, %v1587_v14  ;;  %v1633_v14 = vmul.f32 %v3643_v48, %v3643_v48  ;;  %v3807_v48 = vld [vmem:[#allocation5 + $0x20] sm:$0xff]  }
 0x1e7   :  { %v1660_v11 = vadd.f32 %v1659_v53, %v1621_v42  ;;  %v4250_v53 = vld [vmem:[#allocation46_spill] sm:$0xff] }
 0x1e8   :  { %v1589_v23 = vmul.f32 %v3617_v32, %v4250_v53  ;;  %v1628_v50 = vmul.f32 %v1588_v6, %v1588_v6 }
 0x1e9   :  { %v1661_v19 = vadd.f32 %v1660_v11, %v1622_v40  ;;  %v1590_v11 = vmul.f32 %v3620_v16, %v3547_v26 }
 0x1ea   :  { %v1629_v21 = vmul.f32 %v1589_v23, %v1589_v23 }
 0x1eb   :  { %v1662_v10 = vadd.f32 %v1661_v19, %v1623_v39  ;;  %v1591_v19 = vmul.f32 %v3623_v63, %v3552_v52 }
 0x1ed   :  { %v1663_v56 = vadd.f32 %v1662_v10, %v1624_v55  ;;  %v1630_v55 = vmul.f32 %v1590_v11, %v1590_v11  ;;  %v1631_v36 = vmul.f32 %v1591_v19, %v1591_v19  ;;  %v3799_v11 = vld [vmem:[#allocation5] sm:$0xff]   ;;  %v3805_v19 = vld [vmem:[#allocation5 + $0x28] sm:$0xff]  }
 0x1ef   :  { %v1664_v42 = vadd.f32 %v1663_v56, %v1625_v60  ;;  %v1632_v60 = vmul.f32 %v3640_v8, %v3640_v8  ;;  %v3803_v8 = vld [vmem:[#allocation5 + $0x10] sm:$0xff]  }
 0x1f1   :  { %v1665_v40 = vadd.f32 %v1664_v42, %v1626_v35 }
 0x1f3   :  { %v1666_v39 = vadd.f32 %v1665_v40, %v1627_v17  ;;  %v3797_v40 = vld [vmem:[#allocation5 + $0x8] sm:$0xff]  }
 0x1f5   :  { %v1667_v34 = vadd.f32 %v1666_v39, %v1628_v50  ;;  %v3801_v39 = vld [vmem:[#allocation5 + $0x18] sm:$0xff]  }
 0x1f7   :  { %v1668_v10 = vadd.f32 %v1667_v34, %v1629_v21  ;;  %v3845_v21 = vld [vmem:[#allocation5 + $0x78] sm:$0xff]   ;;  %v3853_v34 = vld [vmem:[#allocation5 + $0x88] sm:$0xff]  }
 0x1f8   :  { %4258 = vst [vmem:[#allocation14_spill] sm:$0xff] %v3853_v34 }
 0x1f9   :  { %v1669_v13 = vadd.f32 %v1668_v10, %v1630_v55 }
 0x1fb   :  { %v1670_v56 = vadd.f32 %v1669_v13, %v1631_v36  ;;  %v3813_v36 = vld [vmem:[#allocation5 + $0x38] sm:$0xff]   ;;  %v3815_v13 = vld [vmem:[#allocation5 + $0x30] sm:$0xff]  }
 0x1fc   :  { %4251 = vst [vmem:[#allocation23_spill] sm:$0xff] %v3813_v36 }
 0x1fd   :  { %v1671_v31 = vadd.f32 %v1670_v56, %v1632_v60  ;;  %v3837_v56 = vld [vmem:[#allocation5 + $0x68] sm:$0xff]   ;;  %v3861_v60 = vld [vmem:[#allocation5 + $0x98] sm:$0xff]  }
 0x1fe   :  { %4256 = vst [vmem:[#allocation13_spill] sm:$0xff] %v3837_v56  ;;  %4259 = vst [vmem:[#allocation30_spill] sm:$0xff] %v3861_v60 }
 0x1ff   :  { %v1672_v26 = vadd.f32 %v1671_v31, %v1633_v14 }
 0x201   :  { %v1673_v6 = vrot.slane %v1672_v26, 4 }
 0x203   :  { %v1674_v35 = vadd.f32 %v1673_v6, %v1672_v26  ;;  %v3821_v26 = vld [vmem:[#allocation5 + $0x48] sm:$0xff]   ;;  %v3823_v6 = vld [vmem:[#allocation5 + $0x40] sm:$0xff]  }
 0x204   :  { %4252 = vst [vmem:[#allocation11_spill] sm:$0xff] %v3821_v26  ;;  %4253 = vst [vmem:[#allocation28_spill] sm:$0xff] %v3823_v6  ;;  %v3859_v6 = vld [vmem:[#allocation5 + $0x80] sm:$0xff]  }
 0x205   :  { %v1675_v42 = vrot.slane %v1674_v35, 2 }
 0x207   :  { %v1676_v53 = vadd.f32 %v1675_v42, %v1674_v35  ;;  %v3839_v35 = vld [vmem:[#allocation5 + $0x60] sm:$0xff]  }
 0x208   :  { %4257 = vst [vmem:[#allocation26_spill] sm:$0xff] %v3839_v35 }
 0x209   :  { %v1677_v52 = vrot.slane %v1676_v53, 1 }
 0x20b   :  { %v1678_v23 = vadd.f32 %v1677_v52, %v1676_v53  ;;  %v2474_v53 = vld [vmem:[#allocation5 + $0x90] sm:$0xff]  }
 0x20c   :  { %v2352_v55 = vunpack.c.h.bf16 %v2474_v53 }
 0x20d   :  { %v1679_v17 = vmul.f32 0.0078125, %v1678_v23  ;;  %v3829_v23 = vld [vmem:[#allocation5 + $0x58] sm:$0xff]  }
 0x20e   :  { %4254 = vst [vmem:[#allocation12_spill] sm:$0xff] %v3829_v23 }
 0x20f   :  { %v1680_v50 = vadd.f32 1e-05, %v1679_v17  ;;  %v3831_v17 = vld [vmem:[#allocation5 + $0x50] sm:$0xff]  }
 0x210   :  { %4255 = vst [vmem:[#allocation31_spill] sm:$0xff] %v3831_v17  ;;  %v2351_v17 = vunpack.c.l.bf16 %v2474_v53 }
 0x211   :  { %2916 = vrsqrt.f32 %v1680_v50  ;;  %v3847_v50 = vld [vmem:[#allocation5 + $0x70] sm:$0xff]  }
 0x21b   :  { %v2917_v56 = vpop.eup %2916 }
 0x21c   :  { %v1718_v14 = vmul.f32 %v2917_v56, %v3620_v16  ;;  %v1719_v10 = vmul.f32 %v2917_v56, %v3623_v63  ;;  %v1682_v23 = vmul.f32 %v2917_v56, %v3633_v9  ;;  %v1683_v52 = vmul.f32 %v2917_v56, %v3637_v12 }
 0x21d   :  { %v1684_v42 = vmul.f32 %v2917_v56, %v3647_v1  ;;  %v1685_v53 = vmul.f32 %v2917_v56, %v3655_v22  ;;  %v1686_v26 = vmul.f32 %v2917_v56, %v3659_v7  ;;  %v1687_v35 = vmul.f32 %v2917_v56, %v3665_v24 }
 0x21e   :  { %v1838_v34 = vadd.f32 %v2351_v17, %v1718_v14  ;;  %v1839_v36 = vadd.f32 %v2352_v55, %v1719_v10  ;;  %v1688_v31 = vmul.f32 %v2917_v56, %v3671_v46  ;;  %v1689_v16 = vmul.f32 %v2917_v56, %v3677_v44 }
 0x21f   :  { %v1690_v63 = vmul.f32 %v2917_v56, %v3683_v49  ;;  %v1691_v9 = vmul.f32 %v2917_v56, %v3689_v28  ;;  %v1692_v12 = vmul.f32 %v2917_v56, %v3695_v38  ;;  %v1693_v1 = vmul.f32 %v2917_v56, %v3701_v27 }
 0x220   :  { %v1878_v60 = vmax.f32 %v1838_v34, 0.0  ;;  %v1879_v22 = vmax.f32 %v1839_v36, 0.0  ;;  %v1694_v7 = vmul.f32 %v2917_v56, %v3707_v2  ;;  %v1695_v24 = vmul.f32 %v2917_v56, %v3713_v20  ;;  %v4260_v36 = vld [vmem:[#allocation47_spill] sm:$0xff] }
 0x221   :  { %v1696_v55 = vmul.f32 %v2917_v56, %v3719_v30  ;;  %v1697_v46 = vmul.f32 %v2917_v56, %v3725_v18  ;;  %v1698_v44 = vmul.f32 %v2917_v56, %v3731_v4  ;;  %v1699_v49 = vmul.f32 %v2917_v56, %v3737_v62 }
 0x222   :  { %v2450_v10 = vpack.c.bf16 %v1879_v22, %v1878_v60  ;;  %v1700_v28 = vmul.f32 %v2917_v56, %v3743_v59  ;;  %v1701_v38 = vmul.f32 %v2917_v56, %v3749_v33  ;;  %v1702_v27 = vmul.f32 %v2917_v56, %v3560_v5 }
 0x223   :  { %v1703_v34 = vmul.f32 %v2917_v56, %v3564_v37  ;;  %v1704_v2 = vmul.f32 %v2917_v56, %v3568_v15  ;;  %v1705_v20 = vmul.f32 %v2917_v56, %v3572_v3  ;;  %v1706_v30 = vmul.f32 %v2917_v56, %v3576_v0 }
 0x224   :  { %2493 = vst [vmem:[#allocation7 + $0x90] sm:$0xff] %v2450_v10   ;;  %v1707_v18 = vmul.f32 %v2917_v56, %v3580_v45  ;;  %v1708_v4 = vmul.f32 %v2917_v56, %v3584_v29  ;;  %v1709_v62 = vmul.f32 %v2917_v56, %v3588_v58  ;;  %v1710_v59 = vmul.f32 %v2917_v56, %v3592_v25 }
 0x225   :  { %v1711_v33 = vmul.f32 %v2917_v56, %v3596_v43  ;;  %v1712_v5 = vmul.f32 %v2917_v56, %v3600_v57  ;;  %v1713_v37 = vmul.f32 %v2917_v56, %v3604_v61  ;;  %v1714_v15 = vmul.f32 %v2917_v56, %v3607_v54 }
 0x226   :  { %v1715_v3 = vmul.f32 %v2917_v56, %v3610_v47  ;;  %v1716_v0 = vmul.f32 %v2917_v56, %v3614_v41  ;;  %v1717_v45 = vmul.f32 %v2917_v56, %v3617_v32  ;;  %v1720_v29 = vmul.f32 %v2917_v56, %v3626_v51 }
 0x227   :  { %v1721_v58 = vmul.f32 %v2917_v56, %v4260_v36  ;;  %v4261_v25 = vunpack.c.l.bf16 %v3799_v11  ;;  %v4262_v43 = vunpack.c.h.bf16 %v3799_v11  ;;  %v4263_v61 = vunpack.c.l.bf16 %v3797_v40  ;;  %v4275_v36 = vld [vmem:[#allocation23_spill] sm:$0xff] }
 0x228   :  { %v4264_v47 = vunpack.c.h.bf16 %v3797_v40  ;;  %v4265_v32 = vunpack.c.l.bf16 %v3803_v8  ;;  %v4266_v56 = vunpack.c.h.bf16 %v3803_v8  ;;  %v4267_v11 = vunpack.c.l.bf16 %v3801_v39 }
 0x229   :  { %v3915_v60 = vadd.f32 %v4261_v25, %v1682_v23  ;;  %v3919_v57 = vadd.f32 %v4262_v43, %v1683_v52  ;;  %v3923_v54 = vadd.f32 %v4263_v61, %v1684_v42  ;;  %v4268_v23 = vunpack.c.h.bf16 %v3801_v39  ;;  %v4278_v43 = vld [vmem:[#allocation28_spill] sm:$0xff] }
 0x22a   :  { %v3927_v41 = vadd.f32 %v4264_v47, %v1685_v53  ;;  %v3931_v51 = vadd.f32 %v4265_v32, %v1686_v26  ;;  %v3935_v14 = vadd.f32 %v4266_v56, %v1687_v35  ;;  %v3939_v52 = vadd.f32 %v4267_v11, %v1688_v31  ;;  %v4281_v47 = vld [vmem:[#allocation11_spill] sm:$0xff] }
 0x22b   :  { %v3943_v42 = vadd.f32 %v4268_v23, %v1689_v16  ;;  %v4269_v40 = vunpack.c.l.bf16 %v3807_v48  ;;  %v4270_v53 = vunpack.c.h.bf16 %v3807_v48  ;;  %v4271_v8 = vunpack.c.l.bf16 %v3805_v19  ;;  %v4284_v56 = vld [vmem:[#allocation31_spill] sm:$0xff] }
 0x22c   :  { %v4272_v22 = vunpack.c.h.bf16 %v3805_v19  ;;  %v4273_v39 = vunpack.c.l.bf16 %v3815_v13  ;;  %v4274_v10 = vunpack.c.h.bf16 %v3815_v13  ;;  %v4276_v48 = vunpack.c.l.bf16 %v4275_v36 }
 0x22d   :  { %v3947_v17 = vadd.f32 %v4269_v40, %v1690_v63  ;;  %v3951_v26 = vadd.f32 %v4270_v53, %v1691_v9  ;;  %v3955_v35 = vadd.f32 %v4271_v8, %v1692_v12  ;;  %v4277_v25 = vunpack.c.h.bf16 %v4275_v36  ;;  %v4287_v40 = vld [vmem:[#allocation12_spill] sm:$0xff]  ;;  %v4293_v36 = vld [vmem:[#allocation13_spill] sm:$0xff] }
 0x22e   :  { %v3959_v31 = vadd.f32 %v4272_v22, %v1693_v1  ;;  %v3963_v16 = vadd.f32 %v4273_v39, %v1694_v7  ;;  %v3967_v63 = vadd.f32 %v4274_v10, %v1695_v24  ;;  %v3971_v9 = vadd.f32 %v4276_v48, %v1696_v55  ;;  %v4290_v22 = vld [vmem:[#allocation26_spill] sm:$0xff] }
 0x22f   :  { %v3975_v12 = vadd.f32 %v4277_v25, %v1697_v46  ;;  %v4279_v19 = vunpack.c.l.bf16 %v4278_v43  ;;  %v4280_v61 = vunpack.c.h.bf16 %v4278_v43  ;;  %v4282_v13 = vunpack.c.l.bf16 %v4281_v47 }
 0x230   :  { %v4283_v32 = vunpack.c.h.bf16 %v4281_v47  ;;  %v4285_v11 = vunpack.c.l.bf16 %v4284_v56  ;;  %v4286_v23 = vunpack.c.h.bf16 %v4284_v56  ;;  %v4288_v53 = vunpack.c.l.bf16 %v4287_v40  ;;  %v4302_v56 = vld [vmem:[#allocation14_spill] sm:$0xff] }
 0x231   :  { %v3979_v1 = vadd.f32 %v4279_v19, %v1698_v44  ;;  %v3983_v7 = vadd.f32 %v4280_v61, %v1699_v49  ;;  %v3987_v24 = vadd.f32 %v4282_v13, %v1700_v28  ;;  %v4289_v8 = vunpack.c.h.bf16 %v4287_v40 }
 0x232   :  { %v3991_v55 = vadd.f32 %v4283_v32, %v1701_v38  ;;  %v3995_v46 = vadd.f32 %v4285_v11, %v1702_v27  ;;  %v3999_v44 = vadd.f32 %v4286_v23, %v1703_v34  ;;  %v4003_v49 = vadd.f32 %v4288_v53, %v1704_v2  ;;  %v4305_v23 = vld [vmem:[#allocation30_spill] sm:$0xff] }
 0x233   :  { %v4007_v28 = vadd.f32 %v4289_v8, %v1705_v20  ;;  %v4291_v39 = vunpack.c.l.bf16 %v4290_v22  ;;  %v4292_v10 = vunpack.c.h.bf16 %v4290_v22  ;;  %v4294_v48 = vunpack.c.l.bf16 %v4293_v36 }
 0x234   :  { %v4295_v25 = vunpack.c.h.bf16 %v4293_v36  ;;  %v4296_v43 = vunpack.c.l.bf16 %v3847_v50  ;;  %v4297_v19 = vunpack.c.h.bf16 %v3847_v50  ;;  %v4298_v61 = vunpack.c.l.bf16 %v3845_v21 }
 0x235   :  { %v4011_v38 = vadd.f32 %v4291_v39, %v1706_v30  ;;  %v4015_v27 = vadd.f32 %v4292_v10, %v1707_v18  ;;  %v4019_v34 = vadd.f32 %v4294_v48, %v1708_v4  ;;  %v4299_v47 = vunpack.c.h.bf16 %v3845_v21 }
 0x236   :  { %v4023_v2 = vadd.f32 %v4295_v25, %v1709_v62  ;;  %v4027_v20 = vadd.f32 %v4296_v43, %v1710_v59  ;;  %v4031_v30 = vadd.f32 %v4297_v19, %v1711_v33  ;;  %v4035_v18 = vadd.f32 %v4298_v61, %v1712_v5 }
 0x237   :  { %v4039_v4 = vadd.f32 %v4299_v47, %v1713_v37  ;;  %v4300_v13 = vunpack.c.l.bf16 %v3859_v6  ;;  %v4301_v32 = vunpack.c.h.bf16 %v3859_v6  ;;  %v4303_v50 = vunpack.c.l.bf16 %v4302_v56 }
 0x238   :  { %v4304_v11 = vunpack.c.h.bf16 %v4302_v56  ;;  %v4306_v21 = vunpack.c.l.bf16 %v4305_v23  ;;  %v4307_v40 = vunpack.c.h.bf16 %v4305_v23  ;;  %v1842_v6 = vmax.f32 %v3915_v60, 0.0 }
 0x239   :  { %v4043_v62 = vadd.f32 %v4300_v13, %v1714_v15  ;;  %v4047_v59 = vadd.f32 %v4301_v32, %v1715_v3  ;;  %v4051_v33 = vadd.f32 %v4303_v50, %v1716_v0  ;;  %v1843_v3 = vmax.f32 %v3919_v57, 0.0 }
 0x23a   :  { %v4055_v5 = vadd.f32 %v4304_v11, %v1717_v45  ;;  %v4059_v37 = vadd.f32 %v4306_v21, %v1720_v29  ;;  %v4063_v15 = vadd.f32 %v4307_v40, %v1721_v58  ;;  %v1844_v53 = vmax.f32 %v3923_v54, 0.0 }
 0x23b   :  { %v1845_v0 = vmax.f32 %v3927_v41, 0.0  ;;  %v1846_v8 = vmax.f32 %v3931_v51, 0.0  ;;  %v1847_v45 = vmax.f32 %v3935_v14, 0.0  ;;  %v1848_v22 = vmax.f32 %v3939_v52, 0.0 }
 0x23c   :  { %v1849_v29 = vmax.f32 %v3943_v42, 0.0  ;;  %v1850_v39 = vmax.f32 %v3947_v17, 0.0  ;;  %v1851_v58 = vmax.f32 %v3951_v26, 0.0  ;;  %v1852_v60 = vmax.f32 %v3955_v35, 0.0 }
 0x23d   :  { %v1853_v57 = vmax.f32 %v3959_v31, 0.0  ;;  %v1854_v54 = vmax.f32 %v3963_v16, 0.0  ;;  %v1855_v41 = vmax.f32 %v3967_v63, 0.0  ;;  %v1856_v51 = vmax.f32 %v3971_v9, 0.0 }
 0x23e   :  { %v1857_v14 = vmax.f32 %v3975_v12, 0.0  ;;  %v1858_v52 = vmax.f32 %v3979_v1, 0.0  ;;  %v1859_v42 = vmax.f32 %v3983_v7, 0.0  ;;  %v1860_v17 = vmax.f32 %v3987_v24, 0.0 }
 0x23f   :  { %v1861_v26 = vmax.f32 %v3991_v55, 0.0  ;;  %v1862_v35 = vmax.f32 %v3995_v46, 0.0  ;;  %v1863_v31 = vmax.f32 %v3999_v44, 0.0  ;;  %v1864_v16 = vmax.f32 %v4003_v49, 0.0 }
 0x240   :  { %v1865_v63 = vmax.f32 %v4007_v28, 0.0  ;;  %v1866_v9 = vmax.f32 %v4011_v38, 0.0  ;;  %v1867_v12 = vmax.f32 %v4015_v27, 0.0  ;;  %v1868_v1 = vmax.f32 %v4019_v34, 0.0 }
 0x241   :  { %v1869_v7 = vmax.f32 %v4023_v2, 0.0  ;;  %v1870_v24 = vmax.f32 %v4027_v20, 0.0  ;;  %v1871_v55 = vmax.f32 %v4031_v30, 0.0  ;;  %v1872_v46 = vmax.f32 %v4035_v18, 0.0 }
 0x242   :  { %v1873_v44 = vmax.f32 %v4039_v4, 0.0  ;;  %v1874_v49 = vmax.f32 %v4043_v62, 0.0  ;;  %v1875_v28 = vmax.f32 %v4047_v59, 0.0  ;;  %v1876_v38 = vmax.f32 %v4051_v33, 0.0 }
 0x243   :  { %v1877_v10 = vmax.f32 %v4055_v5, 0.0  ;;  %v1880_v27 = vmax.f32 %v4059_v37, 0.0  ;;  %v1881_v36 = vmax.f32 %v4063_v15, 0.0  ;;  %v2360_v48 = vpack.c.bf16 %v1843_v3, %v1842_v6 }
 0x244   :  { %v2365_v34 = vpack.c.bf16 %v1845_v0, %v1844_v53  ;;  %v2370_v25 = vpack.c.bf16 %v1847_v45, %v1846_v8  ;;  %v2375_v2 = vpack.c.bf16 %v1849_v29, %v1848_v22  ;;  %v2380_v43 = vpack.c.bf16 %v1851_v58, %v1850_v39 }
 0x245   :  { %v2385_v20 = vpack.c.bf16 %v1853_v57, %v1852_v60  ;;  %v2390_v19 = vpack.c.bf16 %v1855_v41, %v1854_v54  ;;  %2361 = vst [vmem:[#allocation7] sm:$0xff] %v2360_v48   ;;  %v2395_v30 = vpack.c.bf16 %v1857_v14, %v1856_v51  ;;  %v2400_v61 = vpack.c.bf16 %v1859_v42, %v1858_v52 }
 0x246   :  { %2476 = vst [vmem:[#allocation7 + $0x8] sm:$0xff] %v2365_v34   ;;  %2477 = vst [vmem:[#allocation7 + $0x10] sm:$0xff] %v2370_v25   ;;  %v2405_v18 = vpack.c.bf16 %v1861_v26, %v1860_v17  ;;  %v2410_v47 = vpack.c.bf16 %v1863_v31, %v1862_v35  ;;  %v2415_v4 = vpack.c.bf16 %v1865_v63, %v1864_v16 }
 0x247   :  { %2478 = vst [vmem:[#allocation7 + $0x18] sm:$0xff] %v2375_v2   ;;  %2479 = vst [vmem:[#allocation7 + $0x20] sm:$0xff] %v2380_v43   ;;  %v2420_v13 = vpack.c.bf16 %v1867_v12, %v1866_v9  ;;  %v2425_v62 = vpack.c.bf16 %v1869_v7, %v1868_v1  ;;  %v2430_v32 = vpack.c.bf16 %v1871_v55, %v1870_v24 }
 0x248   :  { %2480 = vst [vmem:[#allocation7 + $0x28] sm:$0xff] %v2385_v20   ;;  %2481 = vst [vmem:[#allocation7 + $0x30] sm:$0xff] %v2390_v19   ;;  %v2435_v59 = vpack.c.bf16 %v1873_v44, %v1872_v46  ;;  %v2440_v56 = vpack.c.bf16 %v1875_v28, %v1874_v49  ;;  %v2445_v50 = vpack.c.bf16 %v1877_v10, %v1876_v38 }
 0x249   :  { %2482 = vst [vmem:[#allocation7 + $0x38] sm:$0xff] %v2395_v30   ;;  %2483 = vst [vmem:[#allocation7 + $0x40] sm:$0xff] %v2400_v61   ;;  %v2455_v33 = vpack.c.bf16 %v1881_v36, %v1880_v27 }
 0x24a   :  { %2484 = vst [vmem:[#allocation7 + $0x48] sm:$0xff] %v2405_v18   ;;  %2485 = vst [vmem:[#allocation7 + $0x50] sm:$0xff] %v2410_v47  }
 0x24b   :  { %2486 = vst [vmem:[#allocation7 + $0x58] sm:$0xff] %v2415_v4   ;;  %2487 = vst [vmem:[#allocation7 + $0x60] sm:$0xff] %v2420_v13  }
 0x24c   :  { %2488 = vst [vmem:[#allocation7 + $0x68] sm:$0xff] %v2425_v62   ;;  %2489 = vst [vmem:[#allocation7 + $0x70] sm:$0xff] %v2430_v32  }
 0x24d   :  { %2490 = vst [vmem:[#allocation7 + $0x78] sm:$0xff] %v2435_v59   ;;  %2491 = vst [vmem:[#allocation7 + $0x80] sm:$0xff] %v2440_v56  }
 0x24e   :  { %2492 = vst [vmem:[#allocation7 + $0x88] sm:$0xff] %v2445_v50   ;;  %2494 = vst [vmem:[#allocation7 + $0x98] sm:$0xff] %v2455_v33  }
 0x24f   :  { %2973 = shalt.err (!%p2970_p6)
}
 0x250   :  { %s2974_s13 = scalar_lea.hbm %s4122_s4, 2560 }
 0x251   :  { %p2975_p7 = scmp.ne.s32.totalorder %s4122_s4, %s2974_s13  ;;  %p2978_p8 = scmp.lt.u32.totalorder %s2974_s13, %s4122_s4 }
 0x253   :  { %p2980_p9 = pnand %p2978_p8, %p2975_p7 }
 0x255   :  { %2983 = shalt.err (!%p2980_p9)
}
 0x256   :  { %2093 = dma.vmem_to_hbm [thread:$0]  %s2088_s10, 2560, %s4122_s4, [#allocation4], %s2991_s25, %s2991_s25, %s2992_s26  }
 0x257   :  { %2988 = dma.done.wait [#allocation4], 2560  }
 0x258   :  { %2989 = vsyncadd [#allocation4], 4294964736 }
 0x259   :  { %2097 = vsyncpa [#allocation3], 1 }
 0x25a   :  { %2098 = vsyncpa [#allocation6], 1 }
 0x25b   :  { %2099 = vsyncpa [#allocation4], 1 }

</bundles_post_ra>
